<compile_context>
chip_gen: v7x
topology: tpu7x:2x2x1
jax: 0.10.0
libtpu: 0.0.40
codegen_flags: <defaults>
</compile_context>

<pallas_src>
import functools

import jax
import jax.numpy as jnp
from jax.experimental import pallas as pl
from jax.experimental.pallas import tpu as pltpu


# ----------------------------------------------------------------------------
# Pallas kernel: full VAE forward for one batch tile.
#   inputs : x (TB,784), eps (TB,2), 8 weights (VMEM-resident), packed biases
#   outputs: stats (TB,128) lane-dense slab (lanes 0-1 mean, 2-3 log_var),
#            decoded (TB,784)
# ----------------------------------------------------------------------------
def _vae_kernel(
    x_ref, eps_ref,
    w1_ref, w2_ref, wh1_ref, wh2_ref,          # common_fc + fused heads
    wd1_ref, wd2_ref, wd3_ref, wd4_ref,        # decoder_fcs
    bias_ref,                                  # (8, 784) f32 packed biases
    stats_ref, out_ref,
    *, act_dtype,
):
    f32 = jnp.float32

    def dense(h, w_ref, bias_row, width):
        w = w_ref[...]
        b = bias_ref[bias_row:bias_row + 1, 0:width]            # (1, width) f32
        # Activation cast to the weight dtype so bf16 weights hit the MXU's
        # native bf16 path; accumulation stays f32.
        return jnp.dot(h.astype(w.dtype), w, preferred_element_type=f32) + b

    x = x_ref[...]                                              # (TB, 784)

    # ---- encoder: common_fc ----
    h = jnp.tanh(dense(x, w1_ref, 0, 196).astype(act_dtype))    # (TB, 196)
    h = jnp.tanh(dense(h, w2_ref, 1, 48))                       # (TB, 48)  f32

    # ---- fused mean_fc + log_var_fc heads ----
    hh = jnp.tanh(dense(h, wh1_ref, 2, 32))                     # (TB, 32)  f32
    stats = dense(hh, wh2_ref, 3, 128)                          # (TB, 128) f32
    stats_ref[...] = stats.astype(stats_ref.dtype)              # lane-dense store

    mean = stats[:, 0:2]
    log_var = stats[:, 2:4]

    # ---- reparameterization: z = eps * exp(0.5 * log_var) + mean ----
    z = eps_ref[...].astype(f32) * jnp.exp(0.5 * log_var) + mean   # (TB, 2)

    # ---- decoder_fcs (4 x Linear + Tanh, incl. final Tanh) ----
    d = jnp.tanh(dense(z, wd1_ref, 4, 16))                      # (TB, 16)  f32
    d = jnp.tanh(dense(d, wd2_ref, 5, 48))                      # (TB, 48)  f32
    d = jnp.tanh(dense(d, wd3_ref, 6, 196).astype(act_dtype))   # (TB, 196)
    d = jnp.tanh(dense(d, wd4_ref, 7, 784).astype(act_dtype))   # (TB, 784)
    out_ref[...] = d.astype(out_ref.dtype)


# ----------------------------------------------------------------------------
# Parameter construction (deterministic, PyTorch-style U(-1/sqrt(fan_in), ...))
# Weights stored as (in_features, out_features) so the kernel does x @ W.
# ----------------------------------------------------------------------------
def _init_linear(key, fan_in, fan_out):
    kw, kb = jax.random.split(key)
    bound = 1.0 / jnp.sqrt(jnp.float32(fan_in))
    w = jax.random.uniform(kw, (fan_in, fan_out), jnp.float32, -bound, bound)
    b = jax.random.uniform(kb, (1, fan_out), jnp.float32, -bound, bound)
    return w, b


def init_vae_params(key):
    layer_dims = [
        (784, 196), (196, 48),                      # common_fc
        (48, 16), (16, 2),                          # mean_fc
        (48, 16), (16, 2),                          # log_var_fc
        (2, 16), (16, 48), (48, 196), (196, 784),   # decoder_fcs
    ]
    keys = jax.random.split(key, len(layer_dims))
    params = []
    for k, (fi, fo) in zip(keys, layer_dims):
        w, b = _init_linear(k, fi, fo)
        params.append(w)
        params.append(b)
    return params  # flat: [w1,b1, w2,b2, wm1,bm1, wm2,bm2, wv1,bv1, wv2,bv2, wd1..bd4]


# ----------------------------------------------------------------------------
# One-time param prep: fuse the two heads, pad head stage-2 to 128 lanes,
# pack the 8 biases into one (8, 784) f32 buffer, cast weights (bf16 default).
# ----------------------------------------------------------------------------
def prepare_params(raw_params, weight_dtype=jnp.bfloat16):
    (w1, b1, w2, b2,
     wm1, bm1, wm2, bm2,
     wv1, bv1, wv2, bv2,
     wd1, bd1, wd2, bd2, wd3, bd3, wd4, bd4) = raw_params
    f32 = jnp.float32

    # Head stage 1: one (48, 32) matmul instead of two (48, 16).
    wh1 = jnp.concatenate([wm1, wv1], axis=1)           # (48, 32)
    bh1 = jnp.concatenate([bm1, bv1], axis=1)           # (1, 32)

    # Head stage 2: block-diagonal, zero-padded to 128 output lanes.
    wh2 = jnp.zeros((32, 128), f32)
    wh2 = wh2.at[0:16, 0:2].set(wm2)
    wh2 = wh2.at[16:32, 2:4].set(wv2)
    bh2 = jnp.zeros((1, 128), f32)
    bh2 = bh2.at[:, 0:2].set(bm2)
    bh2 = bh2.at[:, 2:4].set(bv2)

    weights = [w1, w2, wh1, wh2, wd1, wd2, wd3, wd4]
    biases = [b1, b2, bh1, bh2, bd1, bd2, bd3, bd4]     # widths 196,48,32,128,16,48,196,784

    bias_pack = jnp.zeros((8, 784), f32)
    for r, b in enumerate(biases):
        bias_pack = bias_pack.at[r, : b.shape[1]].set(b[0].astype(f32))

    weights = [w.astype(weight_dtype) for w in weights]
    return weights, bias_pack


def _round_up(x, m):
    return ((x + m - 1) // m) * m


@functools.lru_cache(maxsize=None)
def _is_pre_v6():
    """True on v5e/v5p and older (no bf16 VPU/EUP, smaller default scoped VMEM)."""
    try:
        kind = jax.devices()[0].device_kind.lower()
    except Exception:
        return True
    return any(t in kind for t in ("v2", "v3", "v4", "v5"))


# ----------------------------------------------------------------------------
# Wrapper: flatten, pad batch to a tile multiple, batch-tiled pallas_call.
# ----------------------------------------------------------------------------
@functools.partial(jax.jit, static_argnames=("block_b", "io_dtype", "act_dtype"))
def vae_forward(x_nchw, eps, weights, bias_pack, block_b=None,
                io_dtype=jnp.bfloat16, act_dtype=None):
    if block_b is None:
        block_b = 512 if _is_pre_v6() else 1024
    if act_dtype is None:
        act_dtype = jnp.float32 if _is_pre_v6() else jnp.bfloat16

    B = x_nchw.shape[0]
    x_flat = x_nchw.reshape(B, 28 * 28).astype(io_dtype)   # bf16 x halves input DMA
    eps = eps.astype(jnp.float32)

    # Batch tile: multiple of 8 sublanes, capped so the grid has >= 2 steps
    # when possible (v7x megacore splits the batch across its two TCs).
    half = -(-B // 2)
    TB = max(8, min(block_b, _round_up(half, 8)))
    Bp = _round_up(B, TB)
    if Bp != B:
        x_flat = jnp.pad(x_flat, ((0, Bp - B), (0, 0)))
        eps = jnp.pad(eps, ((0, Bp - B), (0, 0)))

    grid = (Bp // TB,)

    # Batch-tiled inputs/outputs; weights/biases use constant index_maps so
    # they are fetched once and stay resident in VMEM across grid steps.
    x_spec = pl.BlockSpec((TB, 28 * 28), lambda i: (i, 0))
    eps_spec = pl.BlockSpec((TB, 2), lambda i: (i, 0))
    w_specs = [pl.BlockSpec(w.shape, lambda i: (0, 0)) for w in weights]
    bias_spec = pl.BlockSpec(bias_pack.shape, lambda i: (0, 0))

    out_shapes = (
        jax.ShapeDtypeStruct((Bp, 128), jnp.float32),     # packed [mean|log_var] slab
        jax.ShapeDtypeStruct((Bp, 28 * 28), io_dtype),    # decoded (flat), bf16 default
    )
    out_specs = (
        pl.BlockSpec((TB, 128), lambda i: (i, 0)),
        pl.BlockSpec((TB, 28 * 28), lambda i: (i, 0)),
    )

    kernel = functools.partial(_vae_kernel, act_dtype=act_dtype)

    stats, out_flat = pl.pallas_call(
        kernel,
        grid=grid,
        out_shape=out_shapes,
        in_specs=[x_spec, eps_spec] + w_specs + [bias_spec],
        out_specs=out_specs,
        compiler_params=pltpu.CompilerParams(
            dimension_semantics=("parallel",),     # batch tiles split across TCs (v7x)
            vmem_limit_bytes=32 * 1024 * 1024,     # covers TB=1024 tiles on v5e too
        ),
    )(x_flat, eps, *weights, bias_pack)

    ml = stats[:B, 0:4]            # single slab read; mean/log_var stay f32
    mean = ml[:, 0:2]
    log_var = ml[:, 2:4]
    out = out_flat[:B].reshape(B, 1, 28, 28)   # io_dtype (bf16 by default)
    return mean, log_var, out


# ----------------------------------------------------------------------------
# Pure-JAX reference (same math, unfused params) for a sanity check.
# ----------------------------------------------------------------------------
def vae_forward_ref(x_nchw, eps, params):
    (w1, b1, w2, b2,
     wm1, bm1, wm2, bm2,
     wv1, bv1, wv2, bv2,
     wd1, bd1, wd2, bd2, wd3, bd3, wd4, bd4) = params
    B = x_nchw.shape[0]
    x = x_nchw.reshape(B, 784).astype(jnp.float32)
    h = jnp.tanh(x @ w1 + b1)
    h = jnp.tanh(h @ w2 + b2)
    mean = jnp.tanh(h @ wm1 + bm1) @ wm2 + bm2
    log_var = jnp.tanh(h @ wv1 + bv1) @ wv2 + bv2
    z = eps * jnp.exp(0.5 * log_var) + mean
    d = jnp.tanh(z @ wd1 + bd1)
    d = jnp.tanh(d @ wd2 + bd2)
    d = jnp.tanh(d @ wd3 + bd3)
    d = jnp.tanh(d @ wd4 + bd4)
    return mean, log_var, d.reshape(B, 1, 28, 28)


if __name__ == "__main__":
    key = jax.random.PRNGKey(0)
    k_params, k_x, k_eps = jax.random.split(key, 3)

    B = 8
    raw_params = init_vae_params(k_params)
    x = jax.random.normal(k_x, (B, 1, 28, 28), jnp.float32)
    # torch.randn_like(std) -> Gaussian noise drawn outside the kernel.
    eps = jax.random.normal(k_eps, (B, 2), jnp.float32)

    mean_r, log_var_r, out_r = vae_forward_ref(x, eps, raw_params)

    # ---- float32 path: structural / numerical sanity check ----
    w_f32, bias_pack = prepare_params(raw_params, jnp.float32)
    mean, log_var, out = vae_forward(x, eps, w_f32, bias_pack,
                                     io_dtype=jnp.float32, act_dtype=jnp.float32)
    jax.block_until_ready((mean, log_var, out))
    assert mean.shape == (B, 2) and log_var.shape == (B, 2)
    assert out.shape == (B, 1, 28, 28)
    # MXU f32 matmuls may run as multi-pass bf16 depending on chip / precision
    # defaults, so compare with a modest tolerance.
    assert float(jnp.max(jnp.abs(mean - mean_r))) < 5e-2
    assert float(jnp.max(jnp.abs(log_var - log_var_r))) < 5e-2
    assert float(jnp.max(jnp.abs(out.astype(jnp.float32) - out_r))) < 5e-2

    # ---- default fast path: bf16 weights + bf16 x/out (halved HBM traffic) ----
    w_bf16, bias_pack_b = prepare_params(raw_params)      # bf16 weights by default
    mean_b, log_var_b, out_b = vae_forward(x, eps, w_bf16, bias_pack_b)
    jax.block_until_ready((mean_b, log_var_b, out_b))
    assert out_b.shape == (B, 1, 28, 28)
    assert float(jnp.max(jnp.abs(mean_b - mean_r))) < 0.1
    assert float(jnp.max(jnp.abs(log_var_b - log_var_r))) < 0.1
    assert float(jnp.max(jnp.abs(out_b.astype(jnp.float32) - out_r))) < 0.1

    print("KERNEL_OK")
</pallas_src>

<mosaic_0001>
module attributes {stable_mosaic.version = 11 : i64} {
  func.func @_vae_kernel(%arg0: i32, %arg1: memref<8x784xf32, #tpu.memory_space<vmem>>, %arg2: memref<8x2xf32, #tpu.memory_space<vmem>>, %arg3: memref<784x196xf32, #tpu.memory_space<vmem>>, %arg4: memref<196x48xf32, #tpu.memory_space<vmem>>, %arg5: memref<48x32xf32, #tpu.memory_space<vmem>>, %arg6: memref<32x128xf32, #tpu.memory_space<vmem>>, %arg7: memref<2x16xf32, #tpu.memory_space<vmem>>, %arg8: memref<16x48xf32, #tpu.memory_space<vmem>>, %arg9: memref<48x196xf32, #tpu.memory_space<vmem>>, %arg10: memref<196x784xf32, #tpu.memory_space<vmem>>, %arg11: memref<8x784xf32, #tpu.memory_space<vmem>>, %arg12: memref<8x128xf32, #tpu.memory_space<vmem>>, %arg13: memref<8x784xf32, #tpu.memory_space<vmem>>) attributes {dimension_semantics = [#tpu.dimension_semantics<parallel>], iteration_bounds = array<i64: 1>, scalar_prefetch = 0 : i64, scratch_operands = 0 : i64, tpu.core_type = #tpu.core_type<tc>, window_params = [{transform_indices = @transform_0, window_bounds = array<i64: 8, 784>}, {transform_indices = @transform_1, window_bounds = array<i64: 8, 2>}, {pipeline_mode = #tpu.pipeline_mode<synchronous>, transform_indices = @transform_2, window_bounds = array<i64: 784, 196>}, {pipeline_mode = #tpu.pipeline_mode<synchronous>, transform_indices = @transform_3, window_bounds = array<i64: 196, 48>}, {pipeline_mode = #tpu.pipeline_mode<synchronous>, transform_indices = @transform_4, window_bounds = array<i64: 48, 32>}, {pipeline_mode = #tpu.pipeline_mode<synchronous>, transform_indices = @transform_5, window_bounds = array<i64: 32, 128>}, {pipeline_mode = #tpu.pipeline_mode<synchronous>, transform_indices = @transform_6, window_bounds = array<i64: 2, 16>}, {pipeline_mode = #tpu.pipeline_mode<synchronous>, transform_indices = @transform_7, window_bounds = array<i64: 16, 48>}, {pipeline_mode = #tpu.pipeline_mode<synchronous>, transform_indices = @transform_8, window_bounds = array<i64: 48, 196>}, {pipeline_mode = #tpu.pipeline_mode<synchronous>, transform_indices = @transform_9, window_bounds = array<i64: 196, 784>}, {pipeline_mode = #tpu.pipeline_mode<synchronous>, transform_indices = @transform_10, window_bounds = array<i64: 8, 784>}, {transform_indices = @transform_11, window_bounds = array<i64: 8, 128>}, {transform_indices = @transform_12, window_bounds = array<i64: 8, 784>}]} {
    %c0 = arith.constant 0 : index
    %c0_0 = arith.constant 0 : index
    %0 = vector.load %arg1[%c0, %c0_0] : memref<8x784xf32, #tpu.memory_space<vmem>>, vector<8x784xf32>
    %c0_1 = arith.constant 0 : index
    %c0_2 = arith.constant 0 : index
    %1 = vector.load %arg3[%c0_1, %c0_2] : memref<784x196xf32, #tpu.memory_space<vmem>>, vector<784x196xf32>
    %c0_3 = arith.constant 0 : index
    %c0_4 = arith.constant 0 : index
    %2 = vector.load %arg11[%c0_3, %c0_4] : memref<8x784xf32, #tpu.memory_space<vmem>>, vector<1x196xf32>
    %cst = arith.constant dense<0.000000e+00> : vector<8x196xf32>
    %3 = tpu.matmul %0, %1, %cst {dimension_numbers = #tpu.dot_dimension_numbers<[1], [0], [0], [1], [0, 0, 1, 1], [], []>} : vector<8x784xf32>, vector<784x196xf32>, vector<8x196xf32> -> vector<8x196xf32>
    %4 = vector.broadcast %2 : vector<1x196xf32> to vector<8x196xf32>
    %5 = arith.addf %3, %4 : vector<8x196xf32>
    %6 = math.tanh %5 : vector<8x196xf32>
    %c0_5 = arith.constant 0 : index
    %c0_6 = arith.constant 0 : index
    %7 = vector.load %arg4[%c0_5, %c0_6] : memref<196x48xf32, #tpu.memory_space<vmem>>, vector<196x48xf32>
    %c1 = arith.constant 1 : index
    %c0_7 = arith.constant 0 : index
    %8 = vector.load %arg11[%c1, %c0_7] : memref<8x784xf32, #tpu.memory_space<vmem>>, vector<1x48xf32>
    %cst_8 = arith.constant dense<0.000000e+00> : vector<8x48xf32>
    %9 = tpu.matmul %6, %7, %cst_8 {dimension_numbers = #tpu.dot_dimension_numbers<[1], [0], [0], [1], [0, 0, 1, 1], [], []>} : vector<8x196xf32>, vector<196x48xf32>, vector<8x48xf32> -> vector<8x48xf32>
    %10 = vector.broadcast %8 : vector<1x48xf32> to vector<8x48xf32>
    %11 = arith.addf %9, %10 : vector<8x48xf32>
    %12 = math.tanh %11 : vector<8x48xf32>
    %c0_9 = arith.constant 0 : index
    %c0_10 = arith.constant 0 : index
    %13 = vector.load %arg5[%c0_9, %c0_10] : memref<48x32xf32, #tpu.memory_space<vmem>>, vector<48x32xf32>
    %c2 = arith.constant 2 : index
    %c0_11 = arith.constant 0 : index
    %14 = vector.load %arg11[%c2, %c0_11] : memref<8x784xf32, #tpu.memory_space<vmem>>, vector<1x32xf32>
    %cst_12 = arith.constant dense<0.000000e+00> : vector<8x32xf32>
    %15 = tpu.matmul %12, %13, %cst_12 {dimension_numbers = #tpu.dot_dimension_numbers<[1], [0], [0], [1], [0, 0, 1, 1], [], []>} : vector<8x48xf32>, vector<48x32xf32>, vector<8x32xf32> -> vector<8x32xf32>
    %16 = vector.broadcast %14 : vector<1x32xf32> to vector<8x32xf32>
    %17 = arith.addf %15, %16 : vector<8x32xf32>
    %18 = math.tanh %17 : vector<8x32xf32>
    %c0_13 = arith.constant 0 : index
    %c0_14 = arith.constant 0 : index
    %19 = vector.load %arg6[%c0_13, %c0_14] : memref<32x128xf32, #tpu.memory_space<vmem>>, vector<32x128xf32>
    %c3 = arith.constant 3 : index
    %c0_15 = arith.constant 0 : index
    %20 = vector.load %arg11[%c3, %c0_15] : memref<8x784xf32, #tpu.memory_space<vmem>>, vector<1x128xf32>
    %cst_16 = arith.constant dense<0.000000e+00> : vector<8x128xf32>
    %21 = tpu.matmul %18, %19, %cst_16 {dimension_numbers = #tpu.dot_dimension_numbers<[1], [0], [0], [1], [0, 0, 1, 1], [], []>} : vector<8x32xf32>, vector<32x128xf32>, vector<8x128xf32> -> vector<8x128xf32>
    %22 = vector.broadcast %20 : vector<1x128xf32> to vector<8x128xf32>
    %23 = arith.addf %21, %22 : vector<8x128xf32>
    %c0_17 = arith.constant 0 : index
    %c0_18 = arith.constant 0 : index
    %24 = vector.load %arg12[%c0_17, %c0_18] : memref<8x128xf32, #tpu.memory_space<vmem>>, vector<8x128xf32>
    tpu.vector_store %arg12[%c0_17, %c0_18], %23 {strides = array<i32>} : memref<8x128xf32, #tpu.memory_space<vmem>>, vector<8x128xf32>,
    %25 = vector.extract_strided_slice %23 {offsets = [0, 0], sizes = [8, 2], strides = [1, 1]} : vector<8x128xf32> to vector<8x2xf32>
    %26 = vector.extract_strided_slice %23 {offsets = [0, 2], sizes = [8, 2], strides = [1, 1]} : vector<8x128xf32> to vector<8x2xf32>
    %c0_19 = arith.constant 0 : index
    %c0_20 = arith.constant 0 : index
    %27 = vector.load %arg2[%c0_19, %c0_20] : memref<8x2xf32, #tpu.memory_space<vmem>>, vector<8x2xf32>
    %cst_21 = arith.constant 5.000000e-01 : f32
    %28 = vector.broadcast %cst_21 : f32 to vector<8x2xf32>
    %29 = arith.mulf %28, %26 : vector<8x2xf32>
    %30 = math.exp %29 : vector<8x2xf32>
    %31 = arith.mulf %27, %30 : vector<8x2xf32>
    %32 = arith.addf %31, %25 : vector<8x2xf32>
    %c0_22 = arith.constant 0 : index
    %c0_23 = arith.constant 0 : index
    %33 = vector.load %arg7[%c0_22, %c0_23] : memref<2x16xf32, #tpu.memory_space<vmem>>, vector<2x16xf32>
    %c4 = arith.constant 4 : index
    %c0_24 = arith.constant 0 : index
    %34 = vector.load %arg11[%c4, %c0_24] : memref<8x784xf32, #tpu.memory_space<vmem>>, vector<1x16xf32>
    %cst_25 = arith.constant dense<0.000000e+00> : vector<8x16xf32>
    %35 = tpu.matmul %32, %33, %cst_25 {dimension_numbers = #tpu.dot_dimension_numbers<[1], [0], [0], [1], [0, 0, 1, 1], [], []>} : vector<8x2xf32>, vector<2x16xf32>, vector<8x16xf32> -> vector<8x16xf32>
    %36 = vector.broadcast %34 : vector<1x16xf32> to vector<8x16xf32>
    %37 = arith.addf %35, %36 : vector<8x16xf32>
    %38 = math.tanh %37 : vector<8x16xf32>
    %c0_26 = arith.constant 0 : index
    %c0_27 = arith.constant 0 : index
    %39 = vector.load %arg8[%c0_26, %c0_27] : memref<16x48xf32, #tpu.memory_space<vmem>>, vector<16x48xf32>
    %c5 = arith.constant 5 : index
    %c0_28 = arith.constant 0 : index
    %40 = vector.load %arg11[%c5, %c0_28] : memref<8x784xf32, #tpu.memory_space<vmem>>, vector<1x48xf32>
    %cst_29 = arith.constant dense<0.000000e+00> : vector<8x48xf32>
    %41 = tpu.matmul %38, %39, %cst_29 {dimension_numbers = #tpu.dot_dimension_numbers<[1], [0], [0], [1], [0, 0, 1, 1], [], []>} : vector<8x16xf32>, vector<16x48xf32>, vector<8x48xf32> -> vector<8x48xf32>
    %42 = vector.broadcast %40 : vector<1x48xf32> to vector<8x48xf32>
    %43 = arith.addf %41, %42 : vector<8x48xf32>
    %44 = math.tanh %43 : vector<8x48xf32>
    %c0_30 = arith.constant 0 : index
    %c0_31 = arith.constant 0 : index
    %45 = vector.load %arg9[%c0_30, %c0_31] : memref<48x196xf32, #tpu.memory_space<vmem>>, vector<48x196xf32>
    %c6 = arith.constant 6 : index
    %c0_32 = arith.constant 0 : index
    %46 = vector.load %arg11[%c6, %c0_32] : memref<8x784xf32, #tpu.memory_space<vmem>>, vector<1x196xf32>
    %cst_33 = arith.constant dense<0.000000e+00> : vector<8x196xf32>
    %47 = tpu.matmul %44, %45, %cst_33 {dimension_numbers = #tpu.dot_dimension_numbers<[1], [0], [0], [1], [0, 0, 1, 1], [], []>} : vector<8x48xf32>, vector<48x196xf32>, vector<8x196xf32> -> vector<8x196xf32>
    %48 = vector.broadcast %46 : vector<1x196xf32> to vector<8x196xf32>
    %49 = arith.addf %47, %48 : vector<8x196xf32>
    %50 = math.tanh %49 : vector<8x196xf32>
    %c0_34 = arith.constant 0 : index
    %c0_35 = arith.constant 0 : index
    %51 = vector.load %arg10[%c0_34, %c0_35] : memref<196x784xf32, #tpu.memory_space<vmem>>, vector<196x784xf32>
    %c7 = arith.constant 7 : index
    %c0_36 = arith.constant 0 : index
    %52 = vector.load %arg11[%c7, %c0_36] : memref<8x784xf32, #tpu.memory_space<vmem>>, vector<1x784xf32>
    %cst_37 = arith.constant dense<0.000000e+00> : vector<8x784xf32>
    %53 = tpu.matmul %50, %51, %cst_37 {dimension_numbers = #tpu.dot_dimension_numbers<[1], [0], [0], [1], [0, 0, 1, 1], [], []>} : vector<8x196xf32>, vector<196x784xf32>, vector<8x784xf32> -> vector<8x784xf32>
    %54 = vector.broadcast %52 : vector<1x784xf32> to vector<8x784xf32>
    %55 = arith.addf %53, %54 : vector<8x784xf32>
    %56 = math.tanh %55 : vector<8x784xf32>
    %c0_38 = arith.constant 0 : index
    %c0_39 = arith.constant 0 : index
    %57 = vector.load %arg13[%c0_38, %c0_39] : memref<8x784xf32, #tpu.memory_space<vmem>>, vector<8x784xf32>
    tpu.vector_store %arg13[%c0_38, %c0_39], %56 {strides = array<i32>} : memref<8x784xf32, #tpu.memory_space<vmem>>, vector<8x784xf32>,
    return
  }
  func.func @transform_0(%arg0: i32) -> (i32, i32) {
    %c0_i32 = arith.constant 0 : i32
    %c0_i32_0 = arith.constant 0 : i32
    return %arg0, %c0_i32 : i32, i32
  }
  func.func @transform_1(%arg0: i32) -> (i32, i32) {
    %c0_i32 = arith.constant 0 : i32
    %c0_i32_0 = arith.constant 0 : i32
    return %arg0, %c0_i32 : i32, i32
  }
  func.func @transform_2(%arg0: i32) -> (i32, i32) {
    %c0_i32 = arith.constant 0 : i32
    %c0_i32_0 = arith.constant 0 : i32
    %c0_i32_1 = arith.constant 0 : i32
    return %c0_i32, %c0_i32_0 : i32, i32
  }
  func.func @transform_3(%arg0: i32) -> (i32, i32) {
    %c0_i32 = arith.constant 0 : i32
    %c0_i32_0 = arith.constant 0 : i32
    %c0_i32_1 = arith.constant 0 : i32
    return %c0_i32, %c0_i32_0 : i32, i32
  }
  func.func @transform_4(%arg0: i32) -> (i32, i32) {
    %c0_i32 = arith.constant 0 : i32
    %c0_i32_0 = arith.constant 0 : i32
    %c0_i32_1 = arith.constant 0 : i32
    return %c0_i32, %c0_i32_0 : i32, i32
  }
  func.func @transform_5(%arg0: i32) -> (i32, i32) {
    %c0_i32 = arith.constant 0 : i32
    %c0_i32_0 = arith.constant 0 : i32
    %c0_i32_1 = arith.constant 0 : i32
    return %c0_i32, %c0_i32_0 : i32, i32
  }
  func.func @transform_6(%arg0: i32) -> (i32, i32) {
    %c0_i32 = arith.constant 0 : i32
    %c0_i32_0 = arith.constant 0 : i32
    %c0_i32_1 = arith.constant 0 : i32
    return %c0_i32, %c0_i32_0 : i32, i32
  }
  func.func @transform_7(%arg0: i32) -> (i32, i32) {
    %c0_i32 = arith.constant 0 : i32
    %c0_i32_0 = arith.constant 0 : i32
    %c0_i32_1 = arith.constant 0 : i32
    return %c0_i32, %c0_i32_0 : i32, i32
  }
  func.func @transform_8(%arg0: i32) -> (i32, i32) {
    %c0_i32 = arith.constant 0 : i32
    %c0_i32_0 = arith.constant 0 : i32
    %c0_i32_1 = arith.constant 0 : i32
    return %c0_i32, %c0_i32_0 : i32, i32
  }
  func.func @transform_9(%arg0: i32) -> (i32, i32) {
    %c0_i32 = arith.constant 0 : i32
    %c0_i32_0 = arith.constant 0 : i32
    %c0_i32_1 = arith.constant 0 : i32
    return %c0_i32, %c0_i32_0 : i32, i32
  }
  func.func @transform_10(%arg0: i32) -> (i32, i32) {
    %c0_i32 = arith.constant 0 : i32
    %c0_i32_0 = arith.constant 0 : i32
    %c0_i32_1 = arith.constant 0 : i32
    return %c0_i32, %c0_i32_0 : i32, i32
  }
  func.func @transform_11(%arg0: i32) -> (i32, i32) {
    %c0_i32 = arith.constant 0 : i32
    %c0_i32_0 = arith.constant 0 : i32
    return %arg0, %c0_i32 : i32, i32
  }
  func.func @transform_12(%arg0: i32) -> (i32, i32) {
    %c0_i32 = arith.constant 0 : i32
    %c0_i32_0 = arith.constant 0 : i32
    return %arg0, %c0_i32 : i32, i32
  }
}

</mosaic_0001>

<bundles_post_ra>
// kernel: vae_forward.1
= control target key start
LH: loop header
LB: loop body
LE: loop exit
PB: predicated region body
PF: predicated region fallthrough
CT: control target
= control target key end

     0   :  { %vm255_vm0 = vcmask 130048   ;;  %vm575_vm1 = vcmask 1043456   ;;  %vm571_vm2 = vcmask 556032   ;;  %vm2191_vm3 = vmmov 0   ;;  %s3688_s2 = inlined_call_operand.vmem [shape: f32[784,196], index: 2, kind: input, shape index: {}]   ;;  %s3689_s0 = inlined_call_operand.vmem [shape: f32[8,784], index: 0, kind: input, shape index: {}]   ;;  %s3690_s3 = inlined_call_operand.vmem [shape: f32[196,48], index: 3, kind: input, shape index: {}]   ;;  %s3691_s10 = inlined_call_operand.vmem [shape: f32[8,784], index: 10, kind: input, shape index: {}]   ;;  %s3692_s4 = inlined_call_operand.vmem [shape: f32[48,32], index: 4, kind: input, shape index: {}]   ;;  %s3693_s5 = inlined_call_operand.vmem [shape: f32[32,128], index: 5, kind: input, shape index: {}]   ;;  %s3694_s11 = inlined_call_operand.vmem [shape: f32[8,128], index: 11, kind: output, shape index: {0}]   ;;  %s3695_s6 = inlined_call_operand.vmem [shape: f32[2,16], index: 6, kind: input, shape index: {}]   ;;  %s3696_s1 = inlined_call_operand.vmem [shape: f32[8,2], index: 1, kind: input, shape index: {}]   ;;  %s3697_s7 = inlined_call_operand.vmem [shape: f32[16,48], index: 7, kind: input, shape index: {}]   ;;  %s3698_s8 = inlined_call_operand.vmem [shape: f32[48,196], index: 8, kind: input, shape index: {}]   ;;  %s3699_s9 = inlined_call_operand.vmem [shape: f32[196,784], index: 9, kind: input, shape index: {}]   ;;  %s3700_s12 = inlined_call_operand.vmem [shape: f32[8,784], index: 12, kind: output, shape index: {1}]  }
   0x1   :  { %v48_v0 = vld [vmem:[%s3688_s2 + $0x8] sm:$0xff]  ;;  %v50_v1 = vld [vmem:[%s3688_s2 + $0x18] sm:$0xff]  ;;  %v47_v2 = vld [vmem:[%s3688_s2] sm:$0xff]  ;;  %vm657_vm4 = vcmask 392192   ;;  %vm737_vm5 = vcmask 261120   ;;  %vm828_vm6 = vcmask 1041408  }
   0x2   :  { %v1703_v3 = vpack.c.bf16 %v50_v1, %v48_v0  ;;  %v49_v4 = vld [vmem:[%s3688_s2 + $0x10] sm:$0xff]  ;;  %v52_v5 = vld [vmem:[%s3688_s2 + $0x28] sm:$0xff]  ;;  %v54_v6 = vld [vmem:[%s3688_s2 + $0x38] sm:$0xff]  ;;  %vm824_vm7 = vcmask 15360  }
   0x3   :  { %v1705_v7 = vpack.c.bf16 %v49_v4, %v47_v2  ;;  %v1707_v8 = vpack.c.bf16 %v54_v6, %v52_v5  ;;  %v51_v9 = vld [vmem:[%s3688_s2 + $0x20] sm:$0xff]  ;;  %v53_v10 = vld [vmem:[%s3688_s2 + $0x30] sm:$0xff]  ;;  %v56_v11 = vld [vmem:[%s3688_s2 + $0x48] sm:$0xff] }
   0x4   :  { %1704 = vmatprep.subr.bf16.mxu0 %v1703_v3  ;;  %v58_v12 = vld [vmem:[%s3688_s2 + $0x58] sm:$0xff]  ;;  %v1709_v13 = vpack.c.bf16 %v53_v10, %v51_v9  ;;  %v55_v15 = vld [vmem:[%s3688_s2 + $0x40] sm:$0xff]  ;;  %v57_v16 = vld [vmem:[%s3688_s2 + $0x50] sm:$0xff] }
   0x5   :  { %1706 = vmatpush1.bf16.msra.mxu0 %v1705_v7  ;;  %v1711_v14 = vpack.c.bf16 %v58_v12, %v56_v11  ;;  %v60_v17 = vld [vmem:[%s3688_s2 + $0x68] sm:$0xff]  ;;  %v62_v18 = vld [vmem:[%s3688_s2 + $0x78] sm:$0xff]  ;;  %v1713_v19 = vpack.c.bf16 %v57_v16, %v55_v15  ;;  %v59_v21 = vld [vmem:[%s3688_s2 + $0x60] sm:$0xff] }
   0x6   :  { %1708 = vmatprep.subr.bf16.mxu0 %v1707_v8  ;;  %v1715_v20 = vpack.c.bf16 %v62_v18, %v60_v17  ;;  %v61_v22 = vld [vmem:[%s3688_s2 + $0x70] sm:$0xff]  ;;  %v64_v23 = vld [vmem:[%s3688_s2 + $0x88] sm:$0xff]  ;;  %v66_v24 = vld [vmem:[%s3688_s2 + $0x98] sm:$0xff] }
   0x7   :  { %v1717_v25 = vpack.c.bf16 %v61_v22, %v59_v21  ;;  %v1719_v26 = vpack.c.bf16 %v66_v24, %v64_v23  ;;  %v63_v27 = vld [vmem:[%s3688_s2 + $0x80] sm:$0xff]  ;;  %v65_v28 = vld [vmem:[%s3688_s2 + $0x90] sm:$0xff]  ;;  %v68_v29 = vld [vmem:[%s3688_s2 + $0xa8] sm:$0xff] }
   0x8   :  { %v70_v30 = vld [vmem:[%s3688_s2 + $0xb8] sm:$0xff]  ;;  %v1721_v31 = vpack.c.bf16 %v65_v28, %v63_v27  ;;  %v67_v33 = vld [vmem:[%s3688_s2 + $0xa0] sm:$0xff]  ;;  %v69_v34 = vld [vmem:[%s3688_s2 + $0xb0] sm:$0xff] }
   0x9   :  { %1710 = vmatpush1.bf16.msra.mxu0 %v1709_v13  ;;  %v1723_v32 = vpack.c.bf16 %v70_v30, %v68_v29  ;;  %v72_v35 = vld [vmem:[%s3688_s2 + $0xc8] sm:$0xff]  ;;  %v74_v36 = vld [vmem:[%s3688_s2 + $0xd8] sm:$0xff]  ;;  %v1725_v37 = vpack.c.bf16 %v69_v34, %v67_v33  ;;  %v71_v39 = vld [vmem:[%s3688_s2 + $0xc0] sm:$0xff] }
   0xa   :  { %1712 = vmatprep.subr.bf16.mxu0 %v1711_v14  ;;  %v1727_v38 = vpack.c.bf16 %v74_v36, %v72_v35  ;;  %v73_v40 = vld [vmem:[%s3688_s2 + $0xd0] sm:$0xff]  ;;  %v41_v41 = vld [vmem:[%s3689_s0 + $0x8] sm:$0xff]  ;;  %v78_v43 = vld [vmem:[%s3688_s2 + $0xf8] sm:$0xff] }
   0xb   :  { %v76_v42 = vld [vmem:[%s3688_s2 + $0xe8] sm:$0xff]  ;;  %323 = vmatprep.mubr.f32.mxu0 %v41_v41  ;;  %v1729_v44 = vpack.c.bf16 %v73_v40, %v71_v39  ;;  %v75_v46 = vld [vmem:[%s3688_s2 + $0xe0] sm:$0xff]  ;;  %v77_v47 = vld [vmem:[%s3688_s2 + $0xf0] sm:$0xff] }
   0xc   :  { %v1731_v45 = vpack.c.bf16 %v78_v43, %v76_v42  ;;  %v80_v48 = vld [vmem:[%s3688_s2 + $0x108] sm:$0xff]  ;;  %v82_v49 = vld [vmem:[%s3688_s2 + $0x118] sm:$0xff]  ;;  %v1733_v50 = vpack.c.bf16 %v77_v47, %v75_v46  ;;  %v79_v52 = vld [vmem:[%s3688_s2 + $0x100] sm:$0xff] }
   0xd   :  { %1714 = vmatpush1.bf16.msra.mxu0 %v1713_v19  ;;  %v1735_v51 = vpack.c.bf16 %v82_v49, %v80_v48  ;;  %v81_v53 = vld [vmem:[%s3688_s2 + $0x110] sm:$0xff]  ;;  %v84_v54 = vld [vmem:[%s3688_s2 + $0x128] sm:$0xff]  ;;  %v86_v55 = vld [vmem:[%s3688_s2 + $0x138] sm:$0xff] }
   0xe   :  { %1716 = vmatprep.subr.bf16.mxu0 %v1715_v20  ;;  %v1737_v56 = vpack.c.bf16 %v81_v53, %v79_v52  ;;  %v1739_v57 = vpack.c.bf16 %v86_v55, %v84_v54  ;;  %v83_v58 = vld [vmem:[%s3688_s2 + $0x120] sm:$0xff]  ;;  %v85_v59 = vld [vmem:[%s3688_s2 + $0x130] sm:$0xff]  ;;  %v88_v60 = vld [vmem:[%s3688_s2 + $0x148] sm:$0xff]  ;;  %v2189_v54 = vmov 0.0  }
   0xf   :  { %v90_v61 = vld [vmem:[%s3688_s2 + $0x158] sm:$0xff]  ;;  %v1741_v62 = vpack.c.bf16 %v85_v59, %v83_v58  ;;  %v87_v0 = vld [vmem:[%s3688_s2 + $0x140] sm:$0xff]  ;;  %v89_v1 = vld [vmem:[%s3688_s2 + $0x150] sm:$0xff]  ;;  %536 = vmatprep.mubr.f32.mxu1 %v2189_v54 }
  0x10   :  { %v1743_v63 = vpack.c.bf16 %v90_v61, %v88_v60  ;;  %v92_v2 = vld [vmem:[%s3688_s2 + $0x168] sm:$0xff]  ;;  %v94_v3 = vld [vmem:[%s3688_s2 + $0x178] sm:$0xff]  ;;  %v1745_v4 = vpack.c.bf16 %v89_v1, %v87_v0  ;;  %v91_v6 = vld [vmem:[%s3688_s2 + $0x160] sm:$0xff]  ;;  %v2190_v1 = vmov 0.0|0.0  }
  0x11   :  { %1718 = vmatpush1.bf16.msra.mxu0 %v1717_v25  ;;  %v1747_v5 = vpack.c.bf16 %v94_v3, %v92_v2  ;;  %v93_v7 = vld [vmem:[%s3688_s2 + $0x170] sm:$0xff]  ;;  %v96_v8 = vld [vmem:[%s3688_s2 + $0x188] sm:$0xff]  ;;  %v98_v9 = vld [vmem:[%s3688_s2 + $0x198] sm:$0xff] }
  0x12   :  { %1720 = vmatprep.subr.bf16.mxu0 %v1719_v26  ;;  %v1749_v10 = vpack.c.bf16 %v93_v7, %v91_v6  ;;  %v1751_v11 = vpack.c.bf16 %v98_v9, %v96_v8  ;;  %v95_v12 = vld [vmem:[%s3688_s2 + $0x180] sm:$0xff]  ;;  %v97_v13 = vld [vmem:[%s3688_s2 + $0x190] sm:$0xff]  ;;  %v100_v14 = vld [vmem:[%s3688_s2 + $0x1a8] sm:$0xff] }
  0x13   :  { %v102_v15 = vld [vmem:[%s3688_s2 + $0x1b8] sm:$0xff]  ;;  %v1753_v16 = vpack.c.bf16 %v97_v13, %v95_v12  ;;  %v99_v18 = vld [vmem:[%s3688_s2 + $0x1a0] sm:$0xff]  ;;  %v101_v19 = vld [vmem:[%s3688_s2 + $0x1b0] sm:$0xff] }
  0x14   :  { %v1755_v17 = vpack.c.bf16 %v102_v15, %v100_v14  ;;  %v104_v20 = vld [vmem:[%s3688_s2 + $0x1c8] sm:$0xff]  ;;  %v106_v21 = vld [vmem:[%s3688_s2 + $0x1d8] sm:$0xff]  ;;  %v1757_v22 = vpack.c.bf16 %v101_v19, %v99_v18  ;;  %v103_v24 = vld [vmem:[%s3688_s2 + $0x1c0] sm:$0xff] }
  0x15   :  { %1722 = vmatpush1.bf16.msra.mxu0 %v1721_v31  ;;  %v1759_v23 = vpack.c.bf16 %v106_v21, %v104_v20  ;;  %v105_v25 = vld [vmem:[%s3688_s2 + $0x1d0] sm:$0xff]  ;;  %v108_v26 = vld [vmem:[%s3688_s2 + $0x1e8] sm:$0xff]  ;;  %v110_v27 = vld [vmem:[%s3688_s2 + $0x1f8] sm:$0xff] }
  0x16   :  { %1724 = vmatprep.subr.bf16.mxu0 %v1723_v32  ;;  %v1761_v28 = vpack.c.bf16 %v105_v25, %v103_v24  ;;  %v1763_v29 = vpack.c.bf16 %v110_v27, %v108_v26  ;;  %v107_v30 = vld [vmem:[%s3688_s2 + $0x1e0] sm:$0xff]  ;;  %v109_v31 = vld [vmem:[%s3688_s2 + $0x1f0] sm:$0xff]  ;;  %v112_v32 = vld [vmem:[%s3688_s2 + $0x208] sm:$0xff] }
  0x17   :  { %v114_v33 = vld [vmem:[%s3688_s2 + $0x218] sm:$0xff]  ;;  %v1765_v34 = vpack.c.bf16 %v109_v31, %v107_v30  ;;  %v111_v36 = vld [vmem:[%s3688_s2 + $0x200] sm:$0xff]  ;;  %v117_v43 = vld [vmem:[%s3688_s2 + $0x230] sm:$0xff] }
  0x18   :  { %v1767_v35 = vpack.c.bf16 %v114_v33, %v112_v32  ;;  %v118_v39 = vld [vmem:[%s3688_s2 + $0x238] sm:$0xff]  ;;  %v40_v40 = vld [vmem:[%s3689_s0] sm:$0xff]  ;;  %v240_v47 = vld [vmem:[%s3688_s2 + $0x608] sm:$0xff] }
  0x19   :  { %1726 = vmatpush1.bf16.msra.mxu0 %v1725_v37  ;;  %v113_v37 = vld [vmem:[%s3688_s2 + $0x210] sm:$0xff]  ;;  %v115_v42 = vld [vmem:[%s3688_s2 + $0x220] sm:$0xff]  ;;  %v43_v46 = vld [vmem:[%s3689_s0 + $0x18] sm:$0xff] }
  0x1a   :  { %1728 = vmatprep.subr.bf16.mxu0 %v1727_v38  ;;  %v116_v38 = vld [vmem:[%s3688_s2 + $0x228] sm:$0xff]  ;;  %v1769_v41 = vpack.c.bf16 %v113_v37, %v111_v36  ;;  %v242_v48 = vld [vmem:[%s3688_s2 + $0x618] sm:$0xff]  ;;  %v241_v52 = vld [vmem:[%s3688_s2 + $0x610] sm:$0xff]  ;;  %v1773_v55 = vpack.c.bf16 %v117_v43, %v115_v42 }
  0x1b   :  { %v122_v49 = vld [vmem:[%s3688_s2 + $0x258] sm:$0xff]  ;;  %v119_v59 = vld [vmem:[%s3688_s2 + $0x240] sm:$0xff]  ;;  %v121_v60 = vld [vmem:[%s3688_s2 + $0x250] sm:$0xff] }
  0x1c   :  { %v124_v61 = vld [vmem:[%s3688_s2 + $0x268] sm:$0xff]  ;;  %v547_v2 = vld [vmem:[%s3690_s3 + $0x10] sm:$0xff]  ;;  %v548_v3 = vld [vmem:[%s3690_s3 + $0x18] sm:$0xff] }
  0x1d   :  { %1730 = vmatpush1.bf16.msra.mxu0 %v1729_v44  ;;  %v120_v44 = vld [vmem:[%s3688_s2 + $0x248] sm:$0xff]  ;;  %v123_v6 = vld [vmem:[%s3688_s2 + $0x260] sm:$0xff]  ;;  %v125_v7 = vld [vmem:[%s3688_s2 + $0x270] sm:$0xff] }
  0x1e   :  { %1732 = vmatprep.subr.bf16.mxu0 %v1731_v45  ;;  %v1771_v45 = vpack.c.bf16 %v118_v39, %v116_v38  ;;  %v1775_v58 = vpack.c.bf16 %v122_v49, %v120_v44  ;;  %v128_v8 = vld [vmem:[%s3688_s2 + $0x288] sm:$0xff]  ;;  %v130_v9 = vld [vmem:[%s3688_s2 + $0x298] sm:$0xff]  ;;  %v1781_v13 = vpack.c.bf16 %v125_v7, %v123_v6  ;;  %v127_v15 = vld [vmem:[%s3688_s2 + $0x280] sm:$0xff] }
  0x1f   :  { %v550_v12 = vld [vmem:[%s3690_s3 + $0x28] sm:$0xff]  ;;  %v1783_v14 = vpack.c.bf16 %v130_v9, %v128_v8  ;;  %v134_v18 = vld [vmem:[%s3688_s2 + $0x2b8] sm:$0xff]  ;;  %v551_v20 = vld [vmem:[%s3690_s3 + $0x30] sm:$0xff] }
  0x20   :  { %v552_v21 = vld [vmem:[%s3690_s3 + $0x38] sm:$0xff]  ;;  %v131_v24 = vld [vmem:[%s3688_s2 + $0x2a0] sm:$0xff]  ;;  %v133_v25 = vld [vmem:[%s3688_s2 + $0x2b0] sm:$0xff] }
  0x21   :  { %1734 = vmatpush1.bf16.msra.mxu0 %v1733_v50  ;;  %v1895_v50 = vpack.c.bf16 %v242_v48, %v240_v47  ;;  %v136_v26 = vld [vmem:[%s3688_s2 + $0x2c8] sm:$0xff]  ;;  %v138_v27 = vld [vmem:[%s3688_s2 + $0x2d8] sm:$0xff]  ;;  %v1789_v31 = vpack.c.bf16 %v133_v25, %v131_v24  ;;  %v135_v33 = vld [vmem:[%s3688_s2 + $0x2c0] sm:$0xff] }
  0x22   :  { %1736 = vmatprep.subr.bf16.mxu0 %v1735_v51  ;;  %v239_v51 = vld [vmem:[%s3688_s2 + $0x600] sm:$0xff]  ;;  %v554_v30 = vld [vmem:[%s3690_s3 + $0x48] sm:$0xff]  ;;  %v1791_v32 = vpack.c.bf16 %v138_v27, %v136_v26  ;;  %v142_v36 = vld [vmem:[%s3688_s2 + $0x2f8] sm:$0xff] }
  0x23   :  { %v1897_v53 = vpack.c.bf16 %v241_v52, %v239_v51  ;;  %1896 = vmatprep.subr.bf16.mxu1 %v1895_v50  ;;  %v555_v38 = vld [vmem:[%s3690_s3 + $0x50] sm:$0xff]  ;;  %v556_v39 = vld [vmem:[%s3690_s3 + $0x58] sm:$0xff]  ;;  %v139_v42 = vld [vmem:[%s3688_s2 + $0x2e0] sm:$0xff] }
  0x24   :  { %v141_v43 = vld [vmem:[%s3688_s2 + $0x2f0] sm:$0xff]  ;;  %v144_v44 = vld [vmem:[%s3688_s2 + $0x308] sm:$0xff]  ;;  %v557_v47 = vld [vmem:[%s3690_s3 + $0x60] sm:$0xff] }
  0x25   :  { %1738 = vmatpush1.bf16.msra.mxu0 %v1737_v56  ;;  %v545_v56 = vld [vmem:[%s3690_s3] sm:$0xff]  ;;  %1898 = vmatpush1.bf16.msra.mxu1 %v1897_v53  ;;  %v558_v48 = vld [vmem:[%s3690_s3 + $0x68] sm:$0xff]  ;;  %v1797_v49 = vpack.c.bf16 %v141_v43, %v139_v42  ;;  %v145_v52 = vld [vmem:[%s3688_s2 + $0x310] sm:$0xff] }
  0x26   :  { %1740 = vmatprep.subr.bf16.mxu0 %v1739_v57  ;;  %v546_v57 = vld [vmem:[%s3690_s3 + $0x8] sm:$0xff]  ;;  %1899 = vmatprep.subr.bf16.mxu1 %v2190_v1  ;;  %v143_v51 = vld [vmem:[%s3688_s2 + $0x300] sm:$0xff]  ;;  %v153_v6 = vld [vmem:[%s3688_s2 + $0x350] sm:$0xff] }
  0x27   :  { %v1900_v0 = vpack.c.bf16 %v546_v57, %v545_v56  ;;  %v148_v53 = vld [vmem:[%s3688_s2 + $0x328] sm:$0xff]  ;;  %v1918_v56 = vpack.c.bf16 %v558_v48, %v557_v47  ;;  %v559_v57 = vld [vmem:[%s3690_s3 + $0x70] sm:$0xff]  ;;  %v158_v8 = vld [vmem:[%s3688_s2 + $0x378] sm:$0xff] }
  0x28   :  { %v156_v7 = vld [vmem:[%s3688_s2 + $0x368] sm:$0xff]  ;;  %v165_v24 = vld [vmem:[%s3688_s2 + $0x3b0] sm:$0xff]  ;;  %v170_v26 = vld [vmem:[%s3688_s2 + $0x3d8] sm:$0xff] }
  0x29   :  { %1742 = vmatpush1.bf16.msra.mxu0 %v1741_v62  ;;  %v126_v62 = vld [vmem:[%s3688_s2 + $0x278] sm:$0xff]  ;;  %v168_v25 = vld [vmem:[%s3688_s2 + $0x3c8] sm:$0xff]  ;;  %v177_v42 = vld [vmem:[%s3688_s2 + $0x410] sm:$0xff] }
  0x2a   :  { %1744 = vmatprep.subr.bf16.mxu0 %v1743_v63  ;;  %v46_v63 = vld [vmem:[%s3689_s0 + $0x30] sm:$0xff]  ;;  %v180_v43 = vld [vmem:[%s3688_s2 + $0x428] sm:$0xff]  ;;  %v179_v48 = vld [vmem:[%s3688_s2 + $0x420] sm:$0xff] }
  0x2b   :  { %1625 = vmatmul.mubr.msk.f32.vlgmr.msra.gmra.mrb[0].mxu1 %vm255_vm0, %v46_v63  ;;  %v152_v63 = vld [vmem:[%s3688_s2 + $0x348] sm:$0xff] }
  0x2c   :  { %1901 = vmatpush1.bf16.msra.mxu1 %v1900_v0  ;;  %v154_v0 = vld [vmem:[%s3688_s2 + $0x358] sm:$0xff] }
  0x2d   :  { %1746 = vmatpush1.bf16.msra.mxu0 %v1745_v4  ;;  %v1777_v4 = vpack.c.bf16 %v121_v60, %v119_v59  ;;  %1902 = vmatprep.subr.bf16.mxu1 %v2190_v1  ;;  %v1801_v59 = vpack.c.bf16 %v145_v52, %v143_v51  ;;  %v184_v51 = vld [vmem:[%s3688_s2 + $0x448] sm:$0xff]  ;;  %v186_v52 = vld [vmem:[%s3688_s2 + $0x458] sm:$0xff] }
  0x2e   :  { %1748 = vmatprep.subr.bf16.mxu0 %v1747_v5  ;;  %v1779_v5 = vpack.c.bf16 %v126_v62, %v124_v61  ;;  %v147_v61 = vld [vmem:[%s3688_s2 + $0x320] sm:$0xff]  ;;  %v149_v62 = vld [vmem:[%s3688_s2 + $0x330] sm:$0xff] }
  0x31   :  { %1750 = vmatpush1.bf16.msra.mxu0 %v1749_v10  ;;  %v1903_v10 = vpack.c.bf16 %v548_v3, %v547_v2  ;;  %v1805_v3 = vpack.c.bf16 %v149_v62, %v147_v61  ;;  %v187_v62 = vld [vmem:[%s3688_s2 + $0x460] sm:$0xff] }
  0x32   :  { %1752 = vmatprep.subr.bf16.mxu0 %v1751_v11  ;;  %v549_v11 = vld [vmem:[%s3690_s3 + $0x20] sm:$0xff] }
  0x33   :  { %1904 = vmatpush1.bf16.msra.mxu1 %v1903_v10  ;;  %v1906_v19 = vpack.c.bf16 %v550_v12, %v549_v11  ;;  %v1811_v10 = vpack.c.bf16 %v158_v8, %v156_v7  ;;  %v155_v11 = vld [vmem:[%s3688_s2 + $0x360] sm:$0xff]  ;;  %v157_v12 = vld [vmem:[%s3688_s2 + $0x370] sm:$0xff]  ;;  %v196_v7 = vld [vmem:[%s3688_s2 + $0x4a8] sm:$0xff] }
  0x34   :  { %1905 = vmatprep.subr.bf16.mxu1 %v2190_v1  ;;  %v198_v8 = vld [vmem:[%s3688_s2 + $0x4b8] sm:$0xff] }
  0x35   :  { %1754 = vmatpush1.bf16.msra.mxu0 %v1753_v16  ;;  %v129_v16 = vld [vmem:[%s3688_s2 + $0x290] sm:$0xff] }
  0x36   :  { %1756 = vmatprep.subr.bf16.mxu0 %v1755_v17  ;;  %v132_v17 = vld [vmem:[%s3688_s2 + $0x2a8] sm:$0xff] }
  0x37   :  { %1907 = vmatpush1.bf16.msra.mxu1 %v1906_v19  ;;  %v164_v19 = vld [vmem:[%s3688_s2 + $0x3a8] sm:$0xff] }
  0x38   :  { %1908 = vmatprep.subr.bf16.mxu1 %v2190_v1 }
  0x39   :  { %1758 = vmatpush1.bf16.msra.mxu0 %v1757_v22  ;;  %v1785_v22 = vpack.c.bf16 %v129_v16, %v127_v15  ;;  %v1813_v15 = vpack.c.bf16 %v157_v12, %v155_v11  ;;  %v195_v11 = vld [vmem:[%s3688_s2 + $0x4a0] sm:$0xff]  ;;  %v197_v12 = vld [vmem:[%s3688_s2 + $0x4b0] sm:$0xff] }
  0x3a   :  { %1760 = vmatprep.subr.bf16.mxu0 %v1759_v23  ;;  %v1787_v23 = vpack.c.bf16 %v134_v18, %v132_v17  ;;  %v159_v17 = vld [vmem:[%s3688_s2 + $0x380] sm:$0xff]  ;;  %v161_v18 = vld [vmem:[%s3688_s2 + $0x390] sm:$0xff] }
  0x3d   :  { %1762 = vmatpush1.bf16.msra.mxu0 %v1761_v28  ;;  %v1909_v28 = vpack.c.bf16 %v552_v21, %v551_v20  ;;  %v166_v20 = vld [vmem:[%s3688_s2 + $0x3b8] sm:$0xff]  ;;  %v1817_v21 = vpack.c.bf16 %v161_v18, %v159_v17  ;;  %v199_v17 = vld [vmem:[%s3688_s2 + $0x4c0] sm:$0xff]  ;;  %v201_v18 = vld [vmem:[%s3688_s2 + $0x4d0] sm:$0xff] }
  0x3e   :  { %1764 = vmatprep.subr.bf16.mxu0 %v1763_v29  ;;  %v553_v29 = vld [vmem:[%s3690_s3 + $0x40] sm:$0xff] }
  0x3f   :  { %1910 = vmatpush1.bf16.msra.mxu1 %v1909_v28  ;;  %v1912_v37 = vpack.c.bf16 %v554_v30, %v553_v29  ;;  %v1823_v28 = vpack.c.bf16 %v170_v26, %v168_v25  ;;  %v167_v29 = vld [vmem:[%s3688_s2 + $0x3c0] sm:$0xff]  ;;  %v169_v30 = vld [vmem:[%s3688_s2 + $0x3d0] sm:$0xff]  ;;  %v208_v25 = vld [vmem:[%s3688_s2 + $0x508] sm:$0xff] }
  0x40   :  { %1911 = vmatprep.subr.bf16.mxu1 %v2190_v1  ;;  %v210_v26 = vld [vmem:[%s3688_s2 + $0x518] sm:$0xff] }
  0x41   :  { %1766 = vmatpush1.bf16.msra.mxu0 %v1765_v34  ;;  %v137_v34 = vld [vmem:[%s3688_s2 + $0x2d0] sm:$0xff] }
  0x42   :  { %1768 = vmatprep.subr.bf16.mxu0 %v1767_v35  ;;  %v140_v35 = vld [vmem:[%s3688_s2 + $0x2e8] sm:$0xff] }
  0x43   :  { %1913 = vmatpush1.bf16.msra.mxu1 %v1912_v37  ;;  %v176_v37 = vld [vmem:[%s3688_s2 + $0x408] sm:$0xff] }
  0x44   :  { %324 = vmatmul.mubr.f32.vlgmr.msra.gmra.mrb[0].mxu0 %v40_v40  ;;  %v1793_v40 = vpack.c.bf16 %v137_v34, %v135_v33  ;;  %1914 = vmatprep.subr.bf16.mxu1 %v2190_v1  ;;  %v1825_v33 = vpack.c.bf16 %v169_v30, %v167_v29  ;;  %v207_v29 = vld [vmem:[%s3688_s2 + $0x500] sm:$0xff]  ;;  %v209_v30 = vld [vmem:[%s3688_s2 + $0x510] sm:$0xff] }
  0x45   :  { %1770 = vmatpush1.bf16.msra.mxu0 %v1769_v41  ;;  %394 = vmatprep.mubr.f32.mxu0 %v43_v46  ;;  %v1795_v41 = vpack.c.bf16 %v142_v36, %v140_v35  ;;  %v1915_v46 = vpack.c.bf16 %v556_v39, %v555_v38  ;;  %v171_v35 = vld [vmem:[%s3688_s2 + $0x3e0] sm:$0xff]  ;;  %v173_v36 = vld [vmem:[%s3688_s2 + $0x3f0] sm:$0xff]  ;;  %v178_v38 = vld [vmem:[%s3688_s2 + $0x418] sm:$0xff] }
  0x46   :  { %1772 = vmatprep.subr.bf16.mxu0 %v1771_v45  ;;  %v146_v45 = vld [vmem:[%s3688_s2 + $0x318] sm:$0xff]  ;;  %v1829_v39 = vpack.c.bf16 %v173_v36, %v171_v35  ;;  %v211_v35 = vld [vmem:[%s3688_s2 + $0x520] sm:$0xff]  ;;  %v213_v36 = vld [vmem:[%s3688_s2 + $0x530] sm:$0xff] }
  0x47   :  { %v1799_v50 = vpack.c.bf16 %v146_v45, %v144_v44  ;;  %1916 = vmatpush1.bf16.msra.mxu1 %v1915_v46  ;;  %v182_v44 = vld [vmem:[%s3688_s2 + $0x438] sm:$0xff]  ;;  %v42_v45 = vld [vmem:[%s3689_s0 + $0x10] sm:$0xff] }
  0x48   :  { %1917 = vmatprep.subr.bf16.mxu1 %v2190_v1  ;;  %v1835_v47 = vpack.c.bf16 %v182_v44, %v180_v43  ;;  %v220_v43 = vld [vmem:[%s3688_s2 + $0x568] sm:$0xff]  ;;  %v222_v44 = vld [vmem:[%s3688_s2 + $0x578] sm:$0xff] }
  0x49   :  { %1774 = vmatpush1.bf16.msra.mxu0 %v1773_v55  ;;  %v150_v55 = vld [vmem:[%s3688_s2 + $0x338] sm:$0xff] }
  0x4a   :  { %1776 = vmatprep.subr.bf16.mxu0 %v1775_v58  ;;  %v560_v58 = vld [vmem:[%s3690_s3 + $0x78] sm:$0xff]  ;;  %v1803_v60 = vpack.c.bf16 %v150_v55, %v148_v53  ;;  %v1839_v55 = vpack.c.bf16 %v186_v52, %v184_v51 }
  0x4b   :  { %1919 = vmatpush1.bf16.msra.mxu1 %v1918_v56  ;;  %v1921_v2 = vpack.c.bf16 %v560_v58, %v559_v57  ;;  %v183_v56 = vld [vmem:[%s3688_s2 + $0x440] sm:$0xff]  ;;  %v185_v57 = vld [vmem:[%s3688_s2 + $0x450] sm:$0xff]  ;;  %v188_v58 = vld [vmem:[%s3688_s2 + $0x468] sm:$0xff] }
  0x4c   :  { %1920 = vmatprep.subr.bf16.mxu1 %v2190_v1 }
  0x4d   :  { %1778 = vmatpush1.bf16.msra.mxu0 %v1777_v4  ;;  %v1807_v4 = vpack.c.bf16 %v154_v0, %v152_v63  ;;  %v189_v63 = vld [vmem:[%s3688_s2 + $0x470] sm:$0xff]  ;;  %v192_v0 = vld [vmem:[%s3688_s2 + $0x488] sm:$0xff] }
  0x4e   :  { %1780 = vmatprep.subr.bf16.mxu0 %v1779_v5  ;;  %v151_v5 = vld [vmem:[%s3688_s2 + $0x340] sm:$0xff] }
  0x4f   :  { %1922 = vmatpush1.bf16.msra.mxu1 %v1921_v2  ;;  %v1809_v9 = vpack.c.bf16 %v153_v6, %v151_v5  ;;  %v194_v2 = vld [vmem:[%s3688_s2 + $0x498] sm:$0xff]  ;;  %v191_v5 = vld [vmem:[%s3688_s2 + $0x480] sm:$0xff]  ;;  %v193_v6 = vld [vmem:[%s3688_s2 + $0x490] sm:$0xff] }
  0x50   :  { %1923 = vmatprep.subr.bf16.mxu1 %v2190_v1 }
  0x51   :  { %1782 = vmatpush1.bf16.msra.mxu0 %v1781_v13  ;;  %v160_v13 = vld [vmem:[%s3688_s2 + $0x388] sm:$0xff] }
  0x52   :  { %1784 = vmatprep.subr.bf16.mxu0 %v1783_v14  ;;  %v162_v14 = vld [vmem:[%s3688_s2 + $0x398] sm:$0xff] }
  0x53   :  { %v1815_v16 = vpack.c.bf16 %v162_v14, %v160_v13  ;;  %v200_v13 = vld [vmem:[%s3688_s2 + $0x4c8] sm:$0xff]  ;;  %v202_v14 = vld [vmem:[%s3688_s2 + $0x4d8] sm:$0xff] }
  0x55   :  { %1786 = vmatpush1.bf16.msra.mxu0 %v1785_v22  ;;  %v1819_v22 = vpack.c.bf16 %v166_v20, %v164_v19  ;;  %v204_v19 = vld [vmem:[%s3688_s2 + $0x4e8] sm:$0xff]  ;;  %v206_v20 = vld [vmem:[%s3688_s2 + $0x4f8] sm:$0xff] }
  0x56   :  { %1788 = vmatprep.subr.bf16.mxu0 %v1787_v23  ;;  %v163_v23 = vld [vmem:[%s3688_s2 + $0x3a0] sm:$0xff] }
  0x57   :  { %v1821_v27 = vpack.c.bf16 %v165_v24, %v163_v23  ;;  %v203_v23 = vld [vmem:[%s3688_s2 + $0x4e0] sm:$0xff]  ;;  %v205_v24 = vld [vmem:[%s3688_s2 + $0x4f0] sm:$0xff] }
  0x59   :  { %1790 = vmatpush1.bf16.msra.mxu0 %v1789_v31  ;;  %v172_v31 = vld [vmem:[%s3688_s2 + $0x3e8] sm:$0xff] }
  0x5a   :  { %1792 = vmatprep.subr.bf16.mxu0 %v1791_v32  ;;  %v174_v32 = vld [vmem:[%s3688_s2 + $0x3f8] sm:$0xff] }
  0x5b   :  { %v1827_v34 = vpack.c.bf16 %v174_v32, %v172_v31  ;;  %v212_v31 = vld [vmem:[%s3688_s2 + $0x528] sm:$0xff]  ;;  %v214_v32 = vld [vmem:[%s3688_s2 + $0x538] sm:$0xff] }
  0x5d   :  { %1794 = vmatpush1.bf16.msra.mxu0 %v1793_v40  ;;  %v1831_v40 = vpack.c.bf16 %v178_v38, %v176_v37  ;;  %v216_v37 = vld [vmem:[%s3688_s2 + $0x548] sm:$0xff]  ;;  %v218_v38 = vld [vmem:[%s3688_s2 + $0x558] sm:$0xff] }
  0x5e   :  { %1796 = vmatprep.subr.bf16.mxu0 %v1795_v41  ;;  %v175_v41 = vld [vmem:[%s3688_s2 + $0x400] sm:$0xff] }
  0x5f   :  { %v1833_v46 = vpack.c.bf16 %v177_v42, %v175_v41  ;;  %v215_v41 = vld [vmem:[%s3688_s2 + $0x540] sm:$0xff]  ;;  %v217_v42 = vld [vmem:[%s3688_s2 + $0x550] sm:$0xff] }
  0x61   :  { %1798 = vmatpush1.bf16.msra.mxu0 %v1797_v49  ;;  %v181_v49 = vld [vmem:[%s3688_s2 + $0x430] sm:$0xff] }
  0x62   :  { %1800 = vmatprep.subr.bf16.mxu0 %v1799_v50  ;;  %v45_v50 = vld [vmem:[%s3689_s0 + $0x28] sm:$0xff]  ;;  %v1837_v53 = vpack.c.bf16 %v181_v49, %v179_v48  ;;  %v221_v48 = vld [vmem:[%s3688_s2 + $0x570] sm:$0xff] }
  0x63   :  { %v224_v49 = vld [vmem:[%s3688_s2 + $0x588] sm:$0xff] }
  0x65   :  { %1802 = vmatpush1.bf16.msra.mxu0 %v1801_v59  ;;  %v190_v59 = vld [vmem:[%s3688_s2 + $0x478] sm:$0xff] }
  0x66   :  { %1804 = vmatprep.subr.bf16.mxu0 %v1803_v60  ;;  %v1841_v60 = vpack.c.bf16 %v185_v57, %v183_v56  ;;  %v1843_v61 = vpack.c.bf16 %v190_v59, %v188_v58  ;;  %v228_v56 = vld [vmem:[%s3688_s2 + $0x5a8] sm:$0xff]  ;;  %v230_v57 = vld [vmem:[%s3688_s2 + $0x5b8] sm:$0xff] }
  0x67   :  { %v1883_v59 = vpack.c.bf16 %v230_v57, %v228_v56 }
  0x69   :  { %1806 = vmatpush1.bf16.msra.mxu0 %v1805_v3  ;;  %v1845_v3 = vpack.c.bf16 %v189_v63, %v187_v62  ;;  %v232_v62 = vld [vmem:[%s3688_s2 + $0x5c8] sm:$0xff]  ;;  %v234_v63 = vld [vmem:[%s3688_s2 + $0x5d8] sm:$0xff] }
  0x6a   :  { %1808 = vmatprep.subr.bf16.mxu0 %v1807_v4  ;;  %v1847_v4 = vpack.c.bf16 %v194_v2, %v192_v0  ;;  %v1887_v2 = vpack.c.bf16 %v234_v63, %v232_v62  ;;  %v735_v62 = vld [vmem:[%s3693_s5 + $0x18] sm:$0xff] }
  0x6d   :  { %1810 = vmatpush1.bf16.msra.mxu0 %v1809_v9  ;;  %v1849_v9 = vpack.c.bf16 %v193_v6, %v191_v5  ;;  %v236_v5 = vld [vmem:[%s3688_s2 + $0x5e8] sm:$0xff]  ;;  %v238_v6 = vld [vmem:[%s3688_s2 + $0x5f8] sm:$0xff] }
  0x6e   :  { %1812 = vmatprep.subr.bf16.mxu0 %v1811_v10  ;;  %v1851_v10 = vpack.c.bf16 %v198_v8, %v196_v7  ;;  %v1891_v8 = vpack.c.bf16 %v238_v6, %v236_v5  ;;  %v736_v6 = vld [vmem:[%s3691_s10 + $0x3] ss:$0 sm:$0xff] }
  0x71   :  { %1814 = vmatpush1.bf16.msra.mxu0 %v1813_v15  ;;  %v1853_v15 = vpack.c.bf16 %v197_v12, %v195_v11  ;;  %v44_v12 = vld [vmem:[%s3689_s0 + $0x20] sm:$0xff]  ;;  %s2192_s0 = smov 126  }
  0x72   :  { %1816 = vmatprep.subr.bf16.mxu0 %v1815_v16  ;;  %v1855_v16 = vpack.c.bf16 %v202_v14, %v200_v13  ;;  %v561_v13 = vld [vmem:[%s3690_s3 + $0x80] sm:$0xff]  ;;  %v562_v14 = vld [vmem:[%s3690_s3 + $0x88] sm:$0xff] }
  0x75   :  { %1818 = vmatpush1.bf16.msra.mxu0 %v1817_v21  ;;  %v1857_v21 = vpack.c.bf16 %v201_v18, %v199_v17  ;;  %v564_v17 = vld [vmem:[%s3690_s3 + $0x98] sm:$0xff] }
  0x76   :  { %1820 = vmatprep.subr.bf16.mxu0 %v1819_v22  ;;  %v1859_v22 = vpack.c.bf16 %v206_v20, %v204_v19  ;;  %v565_v20 = vld [vmem:[%s3690_s3 + $0xa0] sm:$0xff] }
  0x79   :  { %1822 = vmatpush1.bf16.msra.mxu0 %v1821_v27  ;;  %v1861_v27 = vpack.c.bf16 %v205_v24, %v203_v23 }
  0x7a   :  { %1824 = vmatprep.subr.bf16.mxu0 %v1823_v28  ;;  %v1863_v28 = vpack.c.bf16 %v210_v26, %v208_v25  ;;  %v568_v25 = vld [vmem:[%s3690_s3 + $0xb8] sm:$0xff] }
  0x7d   :  { %1826 = vmatpush1.bf16.msra.mxu0 %v1825_v33  ;;  %v1865_v33 = vpack.c.bf16 %v209_v30, %v207_v29 }
  0x7e   :  { %1828 = vmatprep.subr.bf16.mxu0 %v1827_v34  ;;  %v1867_v34 = vpack.c.bf16 %v214_v32, %v212_v31  ;;  %v243_v31 = vld [vmem:[%s3691_s10] ss:$8 sm:$0x3] }
  0x81   :  { %1830 = vmatpush1.bf16.msra.mxu0 %v1829_v39  ;;  %v1869_v39 = vpack.c.bf16 %v213_v36, %v211_v35 }
  0x82   :  { %1832 = vmatprep.subr.bf16.mxu0 %v1831_v40  ;;  %v1871_v40 = vpack.c.bf16 %v218_v38, %v216_v37 }
  0x84   :  { %395 = vmatmul.mubr.f32.vlgmr.msra.gmra.mrb[0].mxu0 %v42_v45  ;;  %v1873_v45 = vpack.c.bf16 %v217_v42, %v215_v41 }
  0x85   :  { %1834 = vmatpush1.bf16.msra.mxu0 %v1833_v46  ;;  %465 = vmatprep.mubr.f32.mxu0 %v45_v50  ;;  %v1875_v46 = vpack.c.bf16 %v222_v44, %v220_v43  ;;  %v226_v50 = vld [vmem:[%s3688_s2 + $0x598] sm:$0xff]  ;;  %v650_v43 = vld [vmem:[%s3692_s4] sm:$0xff]  ;;  %v651_v44 = vld [vmem:[%s3692_s4 + $0x8] sm:$0xff] }
  0x86   :  { %1836 = vmatprep.subr.bf16.mxu0 %v1835_v47  ;;  %v219_v47 = vld [vmem:[%s3688_s2 + $0x560] sm:$0xff]  ;;  %v1879_v52 = vpack.c.bf16 %v226_v50, %v224_v49  ;;  %v655_v50 = vld [vmem:[%s3692_s4 + $0x28] sm:$0xff] }
  0x87   :  { %v1877_v51 = vpack.c.bf16 %v221_v48, %v219_v47  ;;  %v653_v47 = vld [vmem:[%s3692_s4 + $0x18] sm:$0xff]  ;;  %v654_v49 = vld [vmem:[%s3692_s4 + $0x20] sm:$0xff] }
  0x89   :  { %1838 = vmatpush1.bf16.msra.mxu0 %v1837_v53  ;;  %v223_v53 = vld [vmem:[%s3688_s2 + $0x580] sm:$0xff] }
  0x8a   :  { %1840 = vmatprep.subr.bf16.mxu0 %v1839_v55  ;;  %v225_v55 = vld [vmem:[%s3688_s2 + $0x590] sm:$0xff] }
  0x8b   :  { %v1881_v58 = vpack.c.bf16 %v225_v55, %v223_v53 }
  0x8d   :  { %1842 = vmatpush1.bf16.msra.mxu0 %v1841_v60  ;;  %v227_v60 = vld [vmem:[%s3688_s2 + $0x5a0] sm:$0xff] }
  0x8e   :  { %1844 = vmatprep.subr.bf16.mxu0 %v1843_v61  ;;  %v229_v61 = vld [vmem:[%s3688_s2 + $0x5b0] sm:$0xff] }
  0x8f   :  { %v1885_v0 = vpack.c.bf16 %v229_v61, %v227_v60  ;;  %v734_v60 = vld [vmem:[%s3693_s5 + $0x10] sm:$0xff] }
  0x90   :  { %v1948_v63 = vpack.c.bf16 %v735_v62, %v734_v60  ;;  %v1129_v60 = vld [vmem:[%s3699_s9 + $0x180] sm:$0xff] }
  0x91   :  { %1846 = vmatpush1.bf16.msra.mxu0 %v1845_v3  ;;  %v231_v3 = vld [vmem:[%s3688_s2 + $0x5c0] sm:$0xff] }
  0x92   :  { %1848 = vmatprep.subr.bf16.mxu0 %v1847_v4  ;;  %v233_v4 = vld [vmem:[%s3688_s2 + $0x5d0] sm:$0xff] }
  0x93   :  { %v1889_v7 = vpack.c.bf16 %v233_v4, %v231_v3 }
  0x95   :  { %1850 = vmatpush1.bf16.msra.mxu0 %v1849_v9  ;;  %v235_v9 = vld [vmem:[%s3688_s2 + $0x5e0] sm:$0xff] }
  0x96   :  { %1852 = vmatprep.subr.bf16.mxu0 %v1851_v10  ;;  %v237_v10 = vld [vmem:[%s3688_s2 + $0x5f0] sm:$0xff] }
  0x97   :  { %v1893_v11 = vpack.c.bf16 %v237_v10, %v235_v9 }
  0x99   :  { %1854 = vmatpush1.bf16.msra.mxu0 %v1853_v15  ;;  %v1924_v15 = vpack.c.bf16 %v562_v14, %v561_v13  ;;  %v812_v14 = vld [vmem:[%s3696_s1] sm:$0xff] }
  0x9a   :  { %1856 = vmatprep.subr.bf16.mxu0 %v1855_v16  ;;  %v563_v16 = vld [vmem:[%s3690_s3 + $0x90] sm:$0xff] }
  0x9b   :  { %1925 = vmatpush1.bf16.msra.mxu1 %v1924_v15  ;;  %v1927_v18 = vpack.c.bf16 %v564_v17, %v563_v16 }
  0x9c   :  { %1926 = vmatprep.subr.bf16.mxu1 %v2190_v1 }
  0x9d   :  { %1858 = vmatpush1.bf16.msra.mxu0 %v1857_v21  ;;  %v566_v21 = vld [vmem:[%s3690_s3 + $0xa8] sm:$0xff] }
  0x9e   :  { %1860 = vmatprep.subr.bf16.mxu0 %v1859_v22  ;;  %v567_v22 = vld [vmem:[%s3690_s3 + $0xb0] sm:$0xff]  ;;  %v1930_v24 = vpack.c.bf16 %v566_v21, %v565_v20  ;;  %v823_v21 = vld [vmem:[%s3691_s10 + $0x4] ss:$0 sm:$0xff] }
  0x9f   :  { %1928 = vmatpush1.bf16.msra.mxu1 %v1927_v18  ;;  %v1933_v26 = vpack.c.bf16 %v568_v25, %v567_v22  ;;  %v903_v18 = vld [vmem:[%s3697_s7] sm:$0xff] }
  0xa0   :  { %1929 = vmatprep.subr.bf16.mxu1 %v2190_v1 }
  0xa1   :  { %1862 = vmatpush1.bf16.msra.mxu0 %v1861_v27  ;;  %v569_v27 = vld [vmem:[%s3690_s3 + $0xc0] sm:$0xf] }
  0xa2   :  { %1864 = vmatprep.subr.bf16.mxu0 %v1863_v28  ;;  %v245_v28 = vlaneseq }
  0xa3   :  { %1931 = vmatpush1.bf16.msra.mxu1 %v1930_v24 }
  0xa4   :  { %1932 = vmatprep.subr.bf16.mxu1 %v2190_v1  ;;  %v2960_v29 = vshrl.u32 %v245_v28, 7 }
  0xa5   :  { %1866 = vmatpush1.bf16.msra.mxu0 %v1865_v33 }
  0xa6   :  { %1868 = vmatprep.subr.bf16.mxu0 %v1867_v34  ;;  %v2963_v30 = vsub.s32 0, %v2960_v29  ;;  %v2969_v32 = vsub.s32 1, %v2960_v29 }
  0xa7   :  { %1934 = vmatpush1.bf16.msra.mxu1 %v1933_v26  ;;  %v981_v26 = vld [vmem:[%s3698_s8 + $0x8] sm:$0xff] }
  0xa8   :  { %627 = vmatprep.subr.mxu1 %v2189_v54  ;;  %v248_v33 = vrot.slane %v243_v31, %v2963_v30  ;;  %v252_v34 = vrot.slane %v243_v31, %v2969_v32  ;;  %v980_v31 = vld [vmem:[%s3698_s8] sm:$0xff] }
  0xa9   :  { %1870 = vmatpush1.bf16.msra.mxu0 %v1869_v39 }
  0xaa   :  { %1872 = vmatprep.subr.bf16.mxu0 %v1871_v40 }
  0xab   :  { %1626 = vmatpush1.msk.msra.mxu1 %vm575_vm1, %v569_v27  ;;  %v983_v27 = vld [vmem:[%s3698_s8 + $0x18] sm:$0xff] }
  0xac   :  { %1935 = vmatprep.subr.bf16.mxu1 %v2190_v1  ;;  %v1953_v28 = vpack.c.bf16 %v983_v27, %v981_v26  ;;  %v1102_v26 = vld [vmem:[%s3699_s9 + $0xa8] sm:$0xff] }
  0xad   :  { %1874 = vmatpush1.bf16.msra.mxu0 %v1873_v45  ;;  %v1936_v45 = vpack.c.bf16 %v651_v44, %v650_v43  ;;  %v988_v44 = vld [vmem:[%s3698_s8 + $0x40] sm:$0xff] }
  0xae   :  { %1876 = vmatprep.subr.bf16.mxu0 %v1875_v46  ;;  %v652_v46 = vld [vmem:[%s3692_s4 + $0x10] sm:$0xff] }
  0xaf   :  { %v1939_v48 = vpack.c.bf16 %v653_v47, %v652_v46  ;;  %v1082_v47 = vld [vmem:[%s3699_s9 + $0x8] sm:$0xff] }
  0xb1   :  { %1878 = vmatpush1.bf16.msra.mxu0 %v1877_v51  ;;  %v1942_v51 = vpack.c.bf16 %v655_v50, %v654_v49  ;;  %v1087_v50 = vld [vmem:[%s3699_s9 + $0x30] sm:$0xff] }
  0xb2   :  { %1880 = vmatprep.subr.bf16.mxu0 %v1879_v52  ;;  %v570_v52 = vld [vmem:[%s3691_s10 + $0x1] ss:$0 sm:$0xff] }
  0xb5   :  { %1882 = vmatpush1.bf16.msra.mxu0 %v1881_v58  ;;  %v732_v58 = vld [vmem:[%s3693_s5] sm:$0xff] }
  0xb6   :  { %1884 = vmatprep.subr.bf16.mxu0 %v1883_v59  ;;  %v733_v59 = vld [vmem:[%s3693_s5 + $0x8] sm:$0xff] }
  0xb7   :  { %v1945_v61 = vpack.c.bf16 %v733_v59, %v732_v58  ;;  %v1122_v58 = vld [vmem:[%s3699_s9 + $0x148] sm:$0xff] }
  0xb9   :  { %1886 = vmatpush1.bf16.msra.mxu0 %v1885_v0  ;;  %v656_v0 = vld [vmem:[%s3691_s10 + $0x2] ss:$0 sm:$0xff] }
  0xba   :  { %1888 = vmatprep.subr.bf16.mxu0 %v1887_v2 }
  0xbd   :  { %1890 = vmatpush1.bf16.msra.mxu0 %v1889_v7 }
  0xbe   :  { %1892 = vmatprep.subr.bf16.mxu0 %v1891_v8 }
  0xc1   :  { %1894 = vmatpush1.bf16.msra.mxu0 %v1893_v11 }
  0xc2   :  { %2109 = vmatprep.subr.bf16.mxu0 %v2190_v1 }
  0xc4   :  { %466 = vmatmul.mubr.f32.vlgmr.msra.gmra.mrb[0].mxu0 %v44_v12  ;;  %v822_v12 = vld [vmem:[%s3695_s6] sm:$0x3] }
  0xfe   :  { %v538_v19 = vpop.f32.mrb[0].mxu1 }
  0xff   :  { %v540_v23 = vpop.f32.mrb[1].mxu1 }
 0x197   :  { %v467_v35 = vpop.f32.mrb[0].mxu0 }
 0x198   :  { %v2145_v36 = vadd.f32 %v467_v35, %v248_v33  ;;  %v469_v37 = vpop.f32.mrb[1].mxu0  ;;  %v982_v33 = vld [vmem:[%s3698_s8 + $0x10] sm:$0xff]  ;;  %v985_v35 = vld [vmem:[%s3698_s8 + $0x28] sm:$0xff] }
 0x199   :  { %v2147_v38 = vadd.f32 %v469_v37, %v252_v34  ;;  %v1955_v34 = vpack.c.bf16 %v982_v33, %v980_v31  ;;  %v984_v37 = vld [vmem:[%s3698_s8 + $0x20] sm:$0xff] }
 0x19a   :  { %v2146_v39 = vadd.f32 %v2145_v36, %v538_v19  ;;  %v904_v19 = vld [vmem:[%s3697_s7 + $0x8] sm:$0xff]  ;;  %v987_v36 = vld [vmem:[%s3698_s8 + $0x38] sm:$0xff]  ;;  %v1117_v31 = vld [vmem:[%s3699_s9 + $0x120] sm:$0xff] }
 0x19b   :  { %v2148_v40 = vadd.f32 %v2147_v38, %v540_v23  ;;  %v1951_v20 = vpack.c.bf16 %v904_v19, %v903_v18  ;;  %v1957_v38 = vpack.c.bf16 %v987_v36, %v985_v35  ;;  %v1081_v19 = vld [vmem:[%s3699_s9] sm:$0xff]  ;;  %v1116_v36 = vld [vmem:[%s3699_s9 + $0x118] sm:$0xff] }
 0x19c   :  { %v1109_v35 = vld [vmem:[%s3699_s9 + $0xe0] sm:$0xff] }
 0x19d   :  { %2157 = vtanh.f32 %v2148_v40  ;;  %v989_v40 = vld [vmem:[%s3698_s8 + $0x48] sm:$0xff] }
 0x19e   :  { %2159 = vtanh.f32 %v2146_v39  ;;  %v986_v39 = vld [vmem:[%s3698_s8 + $0x30] sm:$0xff] }
 0x1a7   :  { %v2158_v41 = vpop.eup %2157 }
 0x1a8   :  { %v2160_v42 = vpop.eup %2159  ;;  %1627 = vmatprep.mubr.msk.f32.mxu1 %vm571_vm2, %v2158_v41  ;;  %v991_v41 = vld [vmem:[%s3698_s8 + $0x58] sm:$0xff] }
 0x1a9   :  { %644 = vmatmul.mubr.f32.vlgmr.msra.gmra.mrb[2].mxu1 %v2160_v42  ;;  %v1959_v42 = vpack.c.bf16 %v986_v39, %v984_v37  ;;  %v1961_v43 = vpack.c.bf16 %v991_v41, %v989_v40  ;;  %v1124_v37 = vld [vmem:[%s3699_s9 + $0x158] sm:$0xff]  ;;  %v1975_v39 = vpack.c.bf16 %v1116_v36, %v1109_v35  ;;  %v1123_v41 = vld [vmem:[%s3699_s9 + $0x150] sm:$0xff]  ;;  %v1242_v36 = vld [vmem:[%s3699_s9 + $0x508] sm:$0xff] }
 0x1aa   :  { %1937 = vmatpush3.bf16.msra.mxu1 %v1936_v45  ;;  %1677 = vmatprep.mubr.msk.f32.mxu1 %vm2191_vm3, %v2189_v54  ;;  %v990_v45 = vld [vmem:[%s3698_s8 + $0x50] sm:$0xff] }
 0x1ab   :  { %1938 = vmatprep.subr.bf16.mxu1 %v2190_v1  ;;  %v1963_v46 = vpack.c.bf16 %v990_v45, %v988_v44  ;;  %v1145_v44 = vld [vmem:[%s3699_s9 + $0x200] sm:$0xff]  ;;  %v1235_v35 = vld [vmem:[%s3699_s9 + $0x4d0] sm:$0xff] }
 0x1ae   :  { %1940 = vmatpush3.bf16.msra.mxu1 %v1939_v48  ;;  %v1089_v48 = vld [vmem:[%s3699_s9 + $0x40] sm:$0xff] }
 0x1af   :  { %1941 = vmatprep.subr.bf16.mxu1 %v2190_v1  ;;  %v1965_v49 = vpack.c.bf16 %v1089_v48, %v1082_v47  ;;  %v1137_v47 = vld [vmem:[%s3699_s9 + $0x1c0] sm:$0xff]  ;;  %v1144_v48 = vld [vmem:[%s3699_s9 + $0x1f8] sm:$0xff] }
 0x1b2   :  { %1943 = vmatpush3.bf16.msra.mxu1 %v1942_v51  ;;  %v1094_v51 = vld [vmem:[%s3699_s9 + $0x68] sm:$0xff] }
 0x1b3   :  { %1944 = vmatprep.subr.bf16.mxu1 %v2190_v1 }
 0x27c   :  { %v645_v53 = vpop.f32.mrb[2].mxu1 }
 0x27d   :  { %v646_v55 = vadd.f32 %v645_v53, %v570_v52  ;;  %v647_v56 = vpop.f32.mrb[3].mxu1  ;;  %v2110_v52 = vpack.c.bf16 %v1094_v51, %v1087_v50  ;;  %v1101_v53 = vld [vmem:[%s3699_s9 + $0xa0] sm:$0xff]  ;;  %v1159_v50 = vld [vmem:[%s3699_s9 + $0x270] sm:$0xff]  ;;  %v1983_v51 = vpack.c.bf16 %v1144_v48, %v1137_v47 }
 0x27f   :  { %2161 = vtanh.f32 %v646_v55  ;;  %2111 = vmatpush1.bf16.msra.mxu0 %v2110_v52  ;;  %v1108_v55 = vld [vmem:[%s3699_s9 + $0xd8] sm:$0xff] }
 0x280   :  { %2112 = vmatprep.subr.bf16.mxu0 %v2190_v1  ;;  %v2113_v56 = vpack.c.bf16 %v1108_v55, %v1101_v53  ;;  %v1151_v53 = vld [vmem:[%s3699_s9 + $0x230] sm:$0xff]  ;;  %v1158_v55 = vld [vmem:[%s3699_s9 + $0x268] sm:$0xff] }
 0x283   :  { %2114 = vmatpush1.bf16.msra.mxu0 %v2113_v56  ;;  %v1166_v56 = vld [vmem:[%s3699_s9 + $0x2a8] sm:$0xff] }
 0x284   :  { %2115 = vmatprep.subr.bf16.mxu0 %v2190_v1 }
 0x289   :  { %v2162_v57 = vpop.eup %2161 }
 0x28a   :  { %1678 = vmatmul.mubr.msk.f32.vlgmr.msra.gmra.mrb[4].mxu1 %vm657_vm4, %v2162_v57  ;;  %v1115_v57 = vld [vmem:[%s3699_s9 + $0x110] sm:$0xff] }
 0x28b   :  { %1688 = vmatprep.mubr.msk.f32.mxu1 %vm2191_vm3, %v2189_v54  ;;  %1946 = vmatpush3.bf16.msra.mxu1 %v1945_v61  ;;  %v2116_v59 = vpack.c.bf16 %v1122_v58, %v1115_v57  ;;  %v1136_v61 = vld [vmem:[%s3699_s9 + $0x1b8] sm:$0xff]  ;;  %v1173_v57 = vld [vmem:[%s3699_s9 + $0x2e0] sm:$0xff]  ;;  %v1987_v58 = vpack.c.bf16 %v1158_v55, %v1151_v53  ;;  %v1083_v53 = vld [vmem:[%s3699_s9 + $0x10] sm:$0xff] }
 0x28c   :  { %1947 = vmatprep.subr.bf16.mxu1 %v2190_v1  ;;  %v2119_v62 = vpack.c.bf16 %v1136_v61, %v1129_v60  ;;  %v1165_v60 = vld [vmem:[%s3699_s9 + $0x2a0] sm:$0xff]  ;;  %v1172_v61 = vld [vmem:[%s3699_s9 + $0x2d8] sm:$0xff]  ;;  %v1090_v55 = vld [vmem:[%s3699_s9 + $0x48] sm:$0xff] }
 0x28d   :  { %2117 = vmatpush1.bf16.msra.mxu0 %v2116_v59  ;;  %v1989_v59 = vpack.c.bf16 %v1173_v57, %v1166_v56  ;;  %v1098_v56 = vld [vmem:[%s3699_s9 + $0x88] sm:$0xff]  ;;  %v1105_v57 = vld [vmem:[%s3699_s9 + $0xc0] sm:$0xff] }
 0x28e   :  { %2118 = vmatprep.subr.bf16.mxu0 %v2190_v1 }
 0x28f   :  { %1949 = vmatpush3.bf16.msra.mxu1 %v1948_v63  ;;  %v1143_v63 = vld [vmem:[%s3699_s9 + $0x1f0] sm:$0xff] }
 0x290   :  { %1691 = vmatprep.subr.mxu1 %v2189_v54 }
 0x291   :  { %2120 = vmatpush1.bf16.msra.mxu0 %v2119_v62  ;;  %v1180_v62 = vld [vmem:[%s3699_s9 + $0x318] sm:$0xff] }
 0x292   :  { %2121 = vmatprep.subr.bf16.mxu0 %v2190_v1 }
 0x35d   :  { %v727_v2 = vpop.f32.mrb[4].mxu1 }
 0x35e   :  { %v728_v3 = vadd.f32 %v727_v2, %v656_v0  ;;  %v1679_v4 = vpop.f32.mrb[5].mxu1  ;;  %v1150_v0 = vld [vmem:[%s3699_s9 + $0x228] sm:$0xff] }
 0x35f   :  { %v2122_v2 = vpack.c.bf16 %v1150_v0, %v1143_v63  ;;  %v1164_v4 = vld [vmem:[%s3699_s9 + $0x298] sm:$0xff]  ;;  %v1187_v63 = vld [vmem:[%s3699_s9 + $0x350] sm:$0xff]  ;;  %v1991_v0 = vpack.c.bf16 %v1172_v61, %v1165_v60  ;;  %v2017_v60 = vpack.c.bf16 %v1105_v57, %v1098_v56  ;;  %v1097_v61 = vld [vmem:[%s3699_s9 + $0x80] sm:$0xff] }
 0x360   :  { %2163 = vtanh.f32 %v728_v3  ;;  %v1157_v3 = vld [vmem:[%s3699_s9 + $0x260] sm:$0xff]  ;;  %v1230_v56 = vld [vmem:[%s3699_s9 + $0x4a8] sm:$0xff] }
 0x361   :  { %2123 = vmatpush1.bf16.msra.mxu0 %v2122_v2  ;;  %v1993_v2 = vpack.c.bf16 %v1187_v63, %v1180_v62  ;;  %v1104_v62 = vld [vmem:[%s3699_s9 + $0xb8] sm:$0xff]  ;;  %v1238_v57 = vld [vmem:[%s3699_s9 + $0x4e8] sm:$0xff] }
 0x362   :  { %2124 = vmatprep.subr.bf16.mxu0 %v2190_v1 }
 0x36a   :  { %v2164_v5 = vpop.eup %2163 }
 0x36b   :  { %1689 = vmatmul.mubr.msk.f32.vlgmr.msra.gmra.mrb[6].mxu1 %vm737_vm5, %v2164_v5  ;;  %v2125_v5 = vpack.c.bf16 %v1164_v4, %v1157_v3  ;;  %v1179_v3 = vld [vmem:[%s3699_s9 + $0x310] sm:$0xff]  ;;  %v1186_v4 = vld [vmem:[%s3699_s9 + $0x348] sm:$0xff] }
 0x36c   :  { %1693 = vmatprep.mubr.msk.f32.mxu1 %vm2191_vm3, %v2189_v54  ;;  %1692 = vmatpush3.msk.msra.mxu1 %vm828_vm6, %v822_v12  ;;  %v1199_v12 = vld [vmem:[%s3699_s9 + $0x3b0] sm:$0xff] }
 0x36d   :  { %1950 = vmatprep.subr.bf16.mxu1 %v2190_v1  ;;  %2126 = vmatpush1.bf16.msra.mxu0 %v2125_v5  ;;  %v1194_v5 = vld [vmem:[%s3699_s9 + $0x388] sm:$0xff] }
 0x36e   :  { %2127 = vmatprep.subr.bf16.mxu0 %v2190_v1 }
 0x43e   :  { %v807_v7 = vpop.f32.mrb[6].mxu1 }
 0x43f   :  { %v808_v8 = vadd.f32 %v807_v7, %v736_v6  ;;  %v1690_v9 = vpop.f32.mrb[7].mxu1  ;;  %v1171_v6 = vld [vmem:[%s3699_s9 + $0x2d0] sm:$0xff]  ;;  %v1178_v7 = vld [vmem:[%s3699_s9 + $0x308] sm:$0xff] }
 0x440   :  { %v1185_v9 = vld [vmem:[%s3699_s9 + $0x340] sm:$0xff] }
 0x441   :  { %811 = vst [vmem:[%s3694_s11] sm:$0xff] %v808_v8  ;;  %v813_v10 = vmul.f32 0.5, %v808_v8 }
 0x443   :  { %v814_v11 = vmul.f32 1.442695, %v813_v10  ;;  %v1192_v10 = vld [vmem:[%s3699_s9 + $0x378] sm:$0xff] }
 0x445   :  { %2165 = vpow2.f32 %v814_v11  ;;  %v2131_v11 = vpack.c.bf16 %v1192_v10, %v1185_v9  ;;  %v1193_v9 = vld [vmem:[%s3699_s9 + $0x380] sm:$0xff]  ;;  %v1200_v10 = vld [vmem:[%s3699_s9 + $0x3b8] sm:$0xff] }
 0x44f   :  { %v2166_v13 = vpop.eup %2165 }
 0x450   :  { %817 = vrot.lane.b32.xlu0 %v2166_v13, %s2192_s0  ;;  %v1206_v13 = vld [vmem:[%s3699_s9 + $0x3e8] sm:$0xff] }
 0x4c2   :  { %v818_v15 = vpop.permute.xlu0 %817 }
 0x4c3   :  { %v820_v16 = vmul.f32 %v818_v15, %v812_v14  ;;  %v2134_v14 = vpack.c.bf16 %v1206_v13, %v1199_v12  ;;  %v905_v15 = vld [vmem:[%s3691_s10 + $0x5] ss:$0 sm:$0xff]  ;;  %v1208_v12 = vld [vmem:[%s3699_s9 + $0x3f8] sm:$0xff]  ;;  %v1215_v13 = vld [vmem:[%s3699_s9 + $0x430] sm:$0xff] }
 0x4c5   :  { %v821_v17 = vadd.f32 %v820_v16, %v808_v8  ;;  %v2128_v8 = vpack.c.bf16 %v1178_v7, %v1171_v6  ;;  %v1201_v6 = vld [vmem:[%s3699_s9 + $0x3c0] sm:$0xff]  ;;  %v1995_v7 = vpack.c.bf16 %v1186_v4, %v1179_v3  ;;  %v2019_v3 = vpack.c.bf16 %v1104_v62, %v1097_v61 }
 0x4c6   :  { %v1237_v62 = vld [vmem:[%s3699_s9 + $0x4e0] sm:$0xff] }
 0x4c7   :  { %1694 = vmatmul.mubr.msk.f32.vlgmr.msra.gmra.mrb[8].mxu1 %vm824_vm7, %v821_v17  ;;  %2129 = vmatpush1.bf16.msra.mxu0 %v2128_v8  ;;  %v1997_v8 = vpack.c.bf16 %v1201_v6, %v1194_v5  ;;  %v1111_v5 = vld [vmem:[%s3699_s9 + $0xf0] sm:$0xff]  ;;  %v1118_v6 = vld [vmem:[%s3699_s9 + $0x128] sm:$0xff] }
 0x4c8   :  { %1700 = vmatprep.mubr.msk.f32.mxu1 %vm2191_vm3, %v2189_v54  ;;  %1952 = vmatpush3.bf16.msra.mxu1 %v1951_v20  ;;  %v1088_v20 = vld [vmem:[%s3699_s9 + $0x38] sm:$0xff] }
 0x4c9   :  { %1954 = vmatprep.subr.bf16.mxu1 %v1953_v28  ;;  %2130 = vmatprep.subr.bf16.mxu0 %v2190_v1  ;;  %v1110_v28 = vld [vmem:[%s3699_s9 + $0xe8] sm:$0xff] }
 0x4cb   :  { %2132 = vmatpush1.bf16.msra.mxu0 %v2131_v11  ;;  %v1999_v11 = vpack.c.bf16 %v1200_v10, %v1193_v9  ;;  %v2023_v9 = vpack.c.bf16 %v1118_v6, %v1111_v5  ;;  %v1093_v5 = vld [vmem:[%s3699_s9 + $0x60] sm:$0xff] }
 0x4cc   :  { %2133 = vmatprep.subr.bf16.mxu0 %v2190_v1  ;;  %v1085_v6 = vld [vmem:[%s3699_s9 + $0x20] sm:$0xff] }
 0x4cf   :  { %2135 = vmatpush1.bf16.msra.mxu0 %v2134_v14  ;;  %v2001_v14 = vpack.c.bf16 %v1215_v13, %v1208_v12  ;;  %v1132_v12 = vld [vmem:[%s3699_s9 + $0x198] sm:$0xff] }
 0x4d0   :  { %2136 = vmatprep.subr.bf16.mxu0 %v2190_v1  ;;  %v1140_v13 = vld [vmem:[%s3699_s9 + $0x1d8] sm:$0xff] }
 0x59a   :  { %v898_v22 = vpop.f32.mrb[8].mxu1 }
 0x59b   :  { %v899_v23 = vadd.f32 %v898_v22, %v823_v21  ;;  %v1695_v24 = vpop.f32.mrb[9].mxu1  ;;  %v1096_v21 = vld [vmem:[%s3699_s9 + $0x78] sm:$0xff]  ;;  %v1103_v22 = vld [vmem:[%s3699_s9 + $0xb0] sm:$0xff] }
 0x59c   :  { %v1969_v24 = vpack.c.bf16 %v1103_v22, %v1096_v21  ;;  %v1222_v21 = vld [vmem:[%s3699_s9 + $0x468] sm:$0xff]  ;;  %v1229_v22 = vld [vmem:[%s3699_s9 + $0x4a0] sm:$0xff] }
 0x59d   :  { %2167 = vtanh.f32 %v899_v23  ;;  %v1967_v23 = vpack.c.bf16 %v1088_v20, %v1081_v19  ;;  %v1220_v19 = vld [vmem:[%s3699_s9 + $0x458] sm:$0xff] }
 0x5a7   :  { %v2168_v25 = vpop.eup %2167 }
 0x5a8   :  { %1701 = vmatmul.mubr.msk.f32.vlgmr.msra.gmra.mrb[10].mxu1 %vm255_vm0, %v2168_v25  ;;  %v1095_v25 = vld [vmem:[%s3699_s9 + $0x70] sm:$0xff] }
 0x5a9   :  { %1072 = vmatprep.mubr.f32.mxu1 %v2189_v54  ;;  %1956 = vmatpush1.bf16.msra.mxu1 %v1955_v34  ;;  %v1971_v33 = vpack.c.bf16 %v1102_v26, %v1095_v25  ;;  %v1973_v34 = vpack.c.bf16 %v1117_v31, %v1110_v28  ;;  %v1228_v25 = vld [vmem:[%s3699_s9 + $0x498] sm:$0xff]  ;;  %v1234_v28 = vld [vmem:[%s3699_s9 + $0x4c8] sm:$0xff] }
 0x5aa   :  { %1958 = vmatprep.subr.bf16.mxu1 %v1957_v38  ;;  %v1131_v38 = vld [vmem:[%s3699_s9 + $0x190] sm:$0xff]  ;;  %v1236_v31 = vld [vmem:[%s3699_s9 + $0x4d8] sm:$0xff] }
 0x5ab   :  { %v1977_v40 = vpack.c.bf16 %v1131_v38, %v1124_v37  ;;  %v2011_v38 = vpack.c.bf16 %v1242_v36, %v1235_v35  ;;  %v1189_v35 = vld [vmem:[%s3699_s9 + $0x360] sm:$0xff] }
 0x5ad   :  { %1960 = vmatpush1.bf16.msra.mxu1 %v1959_v42  ;;  %v1130_v42 = vld [vmem:[%s3699_s9 + $0x188] sm:$0xff] }
 0x5ae   :  { %1962 = vmatprep.subr.bf16.mxu1 %v1961_v43  ;;  %v1138_v43 = vld [vmem:[%s3699_s9 + $0x1c8] sm:$0xff]  ;;  %v1979_v45 = vpack.c.bf16 %v1130_v42, %v1123_v41 }
 0x5af   :  { %v1250_v42 = vld [vmem:[%s3699_s9 + $0x548] sm:$0xf] }
 0x5b1   :  { %1964 = vmatpush1.bf16.msra.mxu1 %v1963_v46  ;;  %v1981_v46 = vpack.c.bf16 %v1145_v44, %v1138_v43  ;;  %v1249_v43 = vld [vmem:[%s3699_s9 + $0x540] sm:$0xf]  ;;  %v1084_v44 = vld [vmem:[%s3699_s9 + $0x18] sm:$0xff] }
 0x5b2   :  { %1966 = vmatprep.subr.bf16.mxu1 %v1965_v49  ;;  %v1152_v49 = vld [vmem:[%s3699_s9 + $0x238] sm:$0xff] }
 0x5b3   :  { %v1985_v52 = vpack.c.bf16 %v1159_v50, %v1152_v49 }
 0x67b   :  { %v975_v16 = vpop.f32.mrb[10].mxu1 }
 0x67c   :  { %v976_v17 = vadd.f32 %v975_v16, %v905_v15  ;;  %v1702_v18 = vpop.f32.mrb[11].mxu1  ;;  %v1207_v15 = vld [vmem:[%s3699_s9 + $0x3f0] sm:$0xff]  ;;  %v1214_v16 = vld [vmem:[%s3699_s9 + $0x428] sm:$0xff] }
 0x67d   :  { %v1213_v18 = vld [vmem:[%s3699_s9 + $0x420] sm:$0xff] }
 0x67e   :  { %2169 = vtanh.f32 %v976_v17  ;;  %v2003_v17 = vpack.c.bf16 %v1214_v16, %v1207_v15  ;;  %v2137_v20 = vpack.c.bf16 %v1220_v19, %v1213_v18  ;;  %v1146_v18 = vld [vmem:[%s3699_s9 + $0x208] sm:$0xff] }
 0x67f   :  { %v1154_v19 = vld [vmem:[%s3699_s9 + $0x248] sm:$0xff] }
 0x680   :  { %2138 = vmatpush1.bf16.msra.mxu0 %v2137_v20  ;;  %v1161_v20 = vld [vmem:[%s3699_s9 + $0x280] sm:$0xff] }
 0x681   :  { %2139 = vmatprep.subr.bf16.mxu0 %v2190_v1 }
 0x688   :  { %v2170_v27 = vpop.eup %2169 }
 0x689   :  { %1634 = vmatmul.mubr.msk.f32.vlgmr.msra.gmra.mrb[12].mxu1 %vm657_vm4, %v2170_v27  ;;  %v1227_v27 = vld [vmem:[%s3699_s9 + $0x490] sm:$0xff] }
 0x68a   :  { %1968 = vmatpush1.bf16.msra.mxu1 %v1967_v23  ;;  %v2005_v23 = vpack.c.bf16 %v1229_v22, %v1222_v21  ;;  %v2033_v22 = vpack.c.bf16 %v1161_v20, %v1154_v19  ;;  %v1113_v20 = vld [vmem:[%s3699_s9 + $0x100] sm:$0xff] }
 0x68b   :  { %1970 = vmatprep.subr.bf16.mxu1 %v1969_v24  ;;  %v1221_v24 = vld [vmem:[%s3699_s9 + $0x460] sm:$0xff] }
 0x68c   :  { %v2007_v26 = vpack.c.bf16 %v1228_v25, %v1221_v24  ;;  %v1160_v24 = vld [vmem:[%s3699_s9 + $0x278] sm:$0xff] }
 0x68d   :  { %v1168_v25 = vld [vmem:[%s3699_s9 + $0x2b8] sm:$0xff] }
 0x68e   :  { %1972 = vmatpush1.bf16.msra.mxu1 %v1971_v33  ;;  %v2140_v33 = vpack.c.bf16 %v1234_v28, %v1227_v27 }
 0x68f   :  { %1974 = vmatprep.subr.bf16.mxu1 %v1973_v34  ;;  %v1243_v34 = vld [vmem:[%s3699_s9 + $0x510] sm:$0xff] }
 0x690   :  { %v2009_v37 = vpack.c.bf16 %v1243_v34, %v1236_v31  ;;  %2141 = vmatpush1.bf16.msra.mxu0 %v2140_v33  ;;  %v1167_v31 = vld [vmem:[%s3699_s9 + $0x2b0] sm:$0xff]  ;;  %v1174_v33 = vld [vmem:[%s3699_s9 + $0x2e8] sm:$0xff] }
 0x691   :  { %2142 = vmatprep.subr.bf16.mxu0 %v2190_v1  ;;  %v1091_v1 = vld [vmem:[%s3699_s9 + $0x50] sm:$0xff]  ;;  %v1182_v34 = vld [vmem:[%s3699_s9 + $0x328] sm:$0xff]  ;;  %v2039_v36 = vpack.c.bf16 %v1174_v33, %v1167_v31 }
 0x692   :  { %1976 = vmatpush1.bf16.msra.mxu1 %v1975_v39  ;;  %v1241_v39 = vld [vmem:[%s3699_s9 + $0x500] sm:$0xff] }
 0x693   :  { %1978 = vmatprep.subr.bf16.mxu1 %v1977_v40  ;;  %v1248_v40 = vld [vmem:[%s3699_s9 + $0x538] sm:$0xff] }
 0x694   :  { %v2143_v41 = vpack.c.bf16 %v1248_v40, %v1241_v39  ;;  %v1188_v39 = vld [vmem:[%s3699_s9 + $0x358] sm:$0xff] }
 0x695   :  { %v1196_v40 = vld [vmem:[%s3699_s9 + $0x398] sm:$0xff] }
 0x696   :  { %1980 = vmatpush1.bf16.msra.mxu1 %v1979_v45  ;;  %2144 = vmatpush1.bf16.msra.mxu0 %v2143_v41  ;;  %v2013_v45 = vpack.c.bf16 %v1091_v1, %v1084_v44  ;;  %v1203_v41 = vld [vmem:[%s3699_s9 + $0x3d0] sm:$0xff]  ;;  %v1202_v1 = vld [vmem:[%s3699_s9 + $0x3c8] sm:$0xff] }
 0x697   :  { %1982 = vmatprep.subr.bf16.mxu1 %v1981_v46  ;;  %1581 = vmatprep.subr.mxu0 %v2189_v54  ;;  %v1255_v46 = vld [vmem:[%s3699_s9 + $0x570] sm:$0xf]  ;;  %v1633_v54 = vld [vmem:[%s3691_s10 + $0x6] ss:$8 sm:$0x3] }
 0x698   :  { %v998_v47 = vrot.slane %v1633_v54, %v2963_v30  ;;  %v1002_v48 = vrot.slane %v1633_v54, %v2969_v32  ;;  %v1195_v44 = vld [vmem:[%s3699_s9 + $0x390] sm:$0xff] }
 0x699   :  { %v2047_v54 = vpack.c.bf16 %v1202_v1, %v1195_v44 }
 0x69a   :  { %1984 = vmatpush1.bf16.msra.mxu1 %v1983_v51  ;;  %1646 = vmatpush1.msk.msra.mxu0 %vm575_vm1, %v1255_v46  ;;  %v1217_v46 = vld [vmem:[%s3699_s9 + $0x440] sm:$0xff] }
 0x69b   :  { %1986 = vmatprep.subr.bf16.mxu1 %v1985_v52 }
 0x69e   :  { %1988 = vmatpush1.bf16.msra.mxu1 %v1987_v58  ;;  %v2015_v58 = vpack.c.bf16 %v1090_v55, %v1083_v53  ;;  %v1223_v55 = vld [vmem:[%s3699_s9 + $0x470] sm:$0xff] }
 0x69f   :  { %1990 = vmatprep.subr.bf16.mxu1 %v1989_v59 }
 0x6a2   :  { %1992 = vmatpush1.bf16.msra.mxu1 %v1991_v0  ;;  %v1112_v0 = vld [vmem:[%s3699_s9 + $0xf8] sm:$0xff] }
 0x6a3   :  { %1994 = vmatprep.subr.bf16.mxu1 %v1993_v2  ;;  %v1119_v2 = vld [vmem:[%s3699_s9 + $0x130] sm:$0xff] }
 0x6a4   :  { %v2021_v4 = vpack.c.bf16 %v1119_v2, %v1112_v0  ;;  %v1244_v0 = vld [vmem:[%s3699_s9 + $0x518] sm:$0xff] }
 0x6a5   :  { %v2059_v2 = vpack.c.bf16 %v1244_v0, %v1237_v62 }
 0x6a6   :  { %1996 = vmatpush1.bf16.msra.mxu1 %v1995_v7  ;;  %v1126_v7 = vld [vmem:[%s3699_s9 + $0x168] sm:$0xff] }
 0x6a7   :  { %1998 = vmatprep.subr.bf16.mxu1 %v1997_v8  ;;  %v1133_v8 = vld [vmem:[%s3699_s9 + $0x1a0] sm:$0xff] }
 0x6a8   :  { %v2025_v10 = vpack.c.bf16 %v1133_v8, %v1126_v7  ;;  %v1092_v7 = vld [vmem:[%s3699_s9 + $0x58] sm:$0xff] }
 0x6a9   :  { %v1100_v8 = vld [vmem:[%s3699_s9 + $0x98] sm:$0xff] }
 0x6aa   :  { %2000 = vmatpush1.bf16.msra.mxu1 %v1999_v11  ;;  %v1125_v11 = vld [vmem:[%s3699_s9 + $0x160] sm:$0xff] }
 0x6ab   :  { %2002 = vmatprep.subr.bf16.mxu1 %v2001_v14  ;;  %v1147_v14 = vld [vmem:[%s3699_s9 + $0x210] sm:$0xff]  ;;  %v2027_v15 = vpack.c.bf16 %v1132_v12, %v1125_v11  ;;  %v2063_v12 = vpack.c.bf16 %v1092_v7, %v1085_v6 }
 0x6ac   :  { %v2029_v16 = vpack.c.bf16 %v1147_v14, %v1140_v13  ;;  %v1099_v14 = vld [vmem:[%s3699_s9 + $0x90] sm:$0xff] }
 0x6ae   :  { %2004 = vmatpush1.bf16.msra.mxu1 %v2003_v17  ;;  %v1139_v17 = vld [vmem:[%s3699_s9 + $0x1d0] sm:$0xff] }
 0x6af   :  { %2006 = vmatprep.subr.bf16.mxu1 %v2005_v23  ;;  %v2031_v21 = vpack.c.bf16 %v1146_v18, %v1139_v17  ;;  %v1153_v23 = vld [vmem:[%s3699_s9 + $0x240] sm:$0xff] }
 0x6b0   :  { %v2035_v27 = vpack.c.bf16 %v1160_v24, %v1153_v23  ;;  %v1121_v17 = vld [vmem:[%s3699_s9 + $0x140] sm:$0xff]  ;;  %v1135_v23 = vld [vmem:[%s3699_s9 + $0x1b0] sm:$0xff] }
 0x6b2   :  { %2008 = vmatpush1.bf16.msra.mxu1 %v2007_v26  ;;  %v1175_v26 = vld [vmem:[%s3699_s9 + $0x2f0] sm:$0xff] }
 0x6b3   :  { %2010 = vmatprep.subr.bf16.mxu1 %v2009_v37  ;;  %v2037_v28 = vpack.c.bf16 %v1175_v26, %v1168_v25  ;;  %v2041_v37 = vpack.c.bf16 %v1189_v35, %v1182_v34  ;;  %v1127_v25 = vld [vmem:[%s3699_s9 + $0x170] sm:$0xff]  ;;  %v1134_v26 = vld [vmem:[%s3699_s9 + $0x1a8] sm:$0xff]  ;;  %v1141_v34 = vld [vmem:[%s3699_s9 + $0x1e0] sm:$0xff] }
 0x6b4   :  { %v2075_v31 = vpack.c.bf16 %v1134_v26, %v1127_v25  ;;  %v1148_v35 = vld [vmem:[%s3699_s9 + $0x218] sm:$0xff] }
 0x6b6   :  { %2012 = vmatpush1.bf16.msra.mxu1 %v2011_v38  ;;  %v1181_v38 = vld [vmem:[%s3699_s9 + $0x320] sm:$0xff] }
 0x6b7   :  { %1637 = vmatprep.subr.msk.mxu1 %vm575_vm1, %v1250_v42  ;;  %v2043_v42 = vpack.c.bf16 %v1188_v39, %v1181_v38  ;;  %v2079_v38 = vpack.c.bf16 %v1148_v35, %v1141_v34 }
 0x6ba   :  { %1638 = vmatpush1.msk.msra.mxu1 %vm575_vm1, %v1249_v43  ;;  %v2045_v43 = vpack.c.bf16 %v1203_v41, %v1196_v40  ;;  %v1155_v40 = vld [vmem:[%s3699_s9 + $0x250] sm:$0xff]  ;;  %v1162_v41 = vld [vmem:[%s3699_s9 + $0x288] sm:$0xff] }
 0x6bb   :  { %2014 = vmatprep.subr.bf16.mxu1 %v2013_v45  ;;  %v1210_v45 = vld [vmem:[%s3699_s9 + $0x408] sm:$0xff]  ;;  %v2083_v44 = vpack.c.bf16 %v1162_v41, %v1155_v40 }
 0x75c   :  { %v1074_v49 = vpop.f32.mrb[12].mxu1 }
 0x75d   :  { %v1075_v50 = vadd.f32 %v1074_v49, %v998_v47  ;;  %v1076_v51 = vpop.f32.mrb[13].mxu1  ;;  %v2049_v47 = vpack.c.bf16 %v1217_v46, %v1210_v45  ;;  %v1216_v49 = vld [vmem:[%s3699_s9 + $0x438] sm:$0xff]  ;;  %v1169_v45 = vld [vmem:[%s3699_s9 + $0x2c0] sm:$0xff] }
 0x75e   :  { %v1077_v52 = vadd.f32 %v1076_v51, %v1002_v48  ;;  %v1209_v48 = vld [vmem:[%s3699_s9 + $0x400] sm:$0xff]  ;;  %v1231_v51 = vld [vmem:[%s3699_s9 + $0x4b0] sm:$0xff]  ;;  %v1176_v46 = vld [vmem:[%s3699_s9 + $0x2f8] sm:$0xff] }
 0x760   :  { %2171 = vtanh.f32 %v1077_v52  ;;  %v2051_v52 = vpack.c.bf16 %v1216_v49, %v1209_v48  ;;  %v2087_v48 = vpack.c.bf16 %v1176_v46, %v1169_v45  ;;  %v1283_v45 = vsub.s32 5, %v2960_v29 }
 0x761   :  { %2173 = vtanh.f32 %v1075_v50  ;;  %v1224_v50 = vld [vmem:[%s3699_s9 + $0x478] sm:$0xff] }
 0x762   :  { %v2053_v53 = vpack.c.bf16 %v1231_v51, %v1224_v50  ;;  %v1183_v50 = vld [vmem:[%s3699_s9 + $0x330] sm:$0xff]  ;;  %v1190_v51 = vld [vmem:[%s3699_s9 + $0x368] sm:$0xff] }
 0x76a   :  { %v3351_v59 = vpop.eup %2171 }
 0x76b   :  { %v3359_v63 = vpop.eup %2173  ;;  %1639 = vmatprep.mubr.msk.f32.mxu1 %vm571_vm2, %v3351_v59  ;;  %1647 = vmatprep.mubr.msk.f32.mxu0 %vm571_vm2, %v3351_v59 }
 0x76c   :  { %1385 = vmatmul.mubr.f32.vlgmr.msra.gmra.mrb[14].mxu1 %v3359_v63  ;;  %1598 = vmatmul.mubr.f32.vlgmr.msra.gmra.mrb[2].mxu0 %v3359_v63 }
 0x76d   :  { %2016 = vmatpush1.bf16.msra.mxu1 %v2015_v58  ;;  %1642 = vmatprep.mubr.msk.f32.mxu1 %vm571_vm2, %v3351_v59  ;;  %v1245_v58 = vld [vmem:[%s3699_s9 + $0x520] sm:$0xff] }
 0x76e   :  { %2018 = vmatprep.subr.bf16.mxu1 %v2017_v60  ;;  %v2055_v60 = vpack.c.bf16 %v1230_v56, %v1223_v55  ;;  %v2057_v61 = vpack.c.bf16 %v1245_v58, %v1238_v57  ;;  %v2091_v55 = vpack.c.bf16 %v1190_v51, %v1183_v50  ;;  %v1197_v57 = vld [vmem:[%s3699_s9 + $0x3a0] sm:$0xff]  ;;  %v1204_v58 = vld [vmem:[%s3699_s9 + $0x3d8] sm:$0xff] }
 0x76f   :  { %v2095_v62 = vpack.c.bf16 %v1204_v58, %v1197_v57 }
 0x771   :  { %2020 = vmatpush1.bf16.msra.mxu1 %v2019_v3  ;;  %v1252_v3 = vld [vmem:[%s3699_s9 + $0x558] sm:$0xf] }
 0x772   :  { %2022 = vmatprep.subr.bf16.mxu1 %v2021_v4  ;;  %v1086_v4 = vld [vmem:[%s3699_s9 + $0x28] sm:$0xff] }
 0x773   :  { %v2061_v11 = vpack.c.bf16 %v1093_v5, %v1086_v4  ;;  %v1226_v4 = vld [vmem:[%s3699_s9 + $0x488] sm:$0xff]  ;;  %v1233_v5 = vld [vmem:[%s3699_s9 + $0x4c0] sm:$0xff] }
 0x774   :  { %v2101_v7 = vpack.c.bf16 %v1233_v5, %v1226_v4 }
 0x775   :  { %2024 = vmatpush1.bf16.msra.mxu1 %v2023_v9  ;;  %v1107_v9 = vld [vmem:[%s3699_s9 + $0xd0] sm:$0xff] }
 0x776   :  { %2026 = vmatprep.subr.bf16.mxu1 %v2025_v10  ;;  %v1251_v10 = vld [vmem:[%s3699_s9 + $0x550] sm:$0xf]  ;;  %v2065_v13 = vpack.c.bf16 %v1107_v9, %v1100_v8  ;;  %v1225_v8 = vld [vmem:[%s3699_s9 + $0x480] sm:$0xff]  ;;  %v1232_v9 = vld [vmem:[%s3699_s9 + $0x4b8] sm:$0xff] }
 0x779   :  { %2028 = vmatpush1.bf16.msra.mxu1 %v2027_v15  ;;  %v1106_v15 = vld [vmem:[%s3699_s9 + $0xc8] sm:$0xff] }
 0x77a   :  { %2030 = vmatprep.subr.bf16.mxu1 %v2029_v16  ;;  %v1114_v16 = vld [vmem:[%s3699_s9 + $0x108] sm:$0xff]  ;;  %v2067_v18 = vpack.c.bf16 %v1106_v15, %v1099_v14  ;;  %v1239_v14 = vld [vmem:[%s3699_s9 + $0x4f0] sm:$0xff] }
 0x77b   :  { %v2069_v19 = vpack.c.bf16 %v1121_v17, %v1114_v16  ;;  %v1246_v15 = vld [vmem:[%s3699_s9 + $0x528] sm:$0xff] }
 0x77c   :  { %v2107_v16 = vpack.c.bf16 %v1246_v15, %v1239_v14  ;;  %v1254_v17 = vld [vmem:[%s3699_s9 + $0x568] sm:$0xf] }
 0x77d   :  { %2032 = vmatpush1.bf16.msra.mxu1 %v2031_v21  ;;  %v1120_v21 = vld [vmem:[%s3699_s9 + $0x138] sm:$0xff] }
 0x77e   :  { %2034 = vmatprep.subr.bf16.mxu1 %v2033_v22  ;;  %v1128_v22 = vld [vmem:[%s3699_s9 + $0x178] sm:$0xff] }
 0x77f   :  { %v2073_v24 = vpack.c.bf16 %v1135_v23, %v1128_v22  ;;  %v1287_v22 = vsub.s32 6, %v2960_v29 }
 0x781   :  { %2036 = vmatpush1.bf16.msra.mxu1 %v2035_v27  ;;  %v1142_v27 = vld [vmem:[%s3699_s9 + $0x1e8] sm:$0xff] }
 0x782   :  { %2038 = vmatprep.subr.bf16.mxu1 %v2037_v28  ;;  %v1149_v28 = vld [vmem:[%s3699_s9 + $0x220] sm:$0xff] }
 0x783   :  { %v2077_v33 = vpack.c.bf16 %v1149_v28, %v1142_v27 }
 0x785   :  { %2040 = vmatpush1.bf16.msra.mxu1 %v2039_v36  ;;  %v1156_v36 = vld [vmem:[%s3699_s9 + $0x258] sm:$0xff] }
 0x786   :  { %2042 = vmatprep.subr.bf16.mxu1 %v2041_v37  ;;  %v1163_v37 = vld [vmem:[%s3699_s9 + $0x290] sm:$0xff] }
 0x787   :  { %v2081_v39 = vpack.c.bf16 %v1163_v37, %v1156_v36  ;;  %v1275_v36 = vsub.s32 3, %v2960_v29 }
 0x789   :  { %2044 = vmatpush1.bf16.msra.mxu1 %v2043_v42  ;;  %v1170_v42 = vld [vmem:[%s3699_s9 + $0x2c8] sm:$0xff] }
 0x78a   :  { %2046 = vmatprep.subr.bf16.mxu1 %v2045_v43  ;;  %v1177_v43 = vld [vmem:[%s3699_s9 + $0x300] sm:$0xff] }
 0x78b   :  { %v2085_v1 = vpack.c.bf16 %v1177_v43, %v1170_v42 }
 0x78d   :  { %2048 = vmatpush1.bf16.msra.mxu1 %v2047_v54  ;;  %v1184_v54 = vld [vmem:[%s3699_s9 + $0x338] sm:$0xff] }
 0x78e   :  { %2050 = vmatprep.subr.bf16.mxu1 %v2049_v47  ;;  %v1191_v47 = vld [vmem:[%s3699_s9 + $0x370] sm:$0xff] }
 0x78f   :  { %v2089_v49 = vpack.c.bf16 %v1191_v47, %v1184_v54 }
 0x791   :  { %2052 = vmatpush1.bf16.msra.mxu1 %v2051_v52  ;;  %v1198_v52 = vld [vmem:[%s3699_s9 + $0x3a8] sm:$0xff] }
 0x792   :  { %2054 = vmatprep.subr.bf16.mxu1 %v2053_v53  ;;  %v1205_v53 = vld [vmem:[%s3699_s9 + $0x3e0] sm:$0xff] }
 0x793   :  { %v2093_v56 = vpack.c.bf16 %v1205_v53, %v1198_v52 }
 0x795   :  { %2056 = vmatpush1.bf16.msra.mxu1 %v2055_v60  ;;  %v1212_v60 = vld [vmem:[%s3699_s9 + $0x418] sm:$0xff] }
 0x796   :  { %2058 = vmatprep.subr.bf16.mxu1 %v2057_v61  ;;  %v1219_v61 = vld [vmem:[%s3699_s9 + $0x450] sm:$0xff] }
 0x797   :  { %v2097_v0 = vpack.c.bf16 %v1219_v61, %v1212_v60 }
 0x799   :  { %2060 = vmatpush1.bf16.msra.mxu1 %v2059_v2  ;;  %v1211_v2 = vld [vmem:[%s3699_s9 + $0x410] sm:$0xff] }
 0x79a   :  { %1640 = vmatprep.subr.msk.mxu1 %vm575_vm1, %v1252_v3  ;;  %v1218_v3 = vld [vmem:[%s3699_s9 + $0x448] sm:$0xff] }
 0x79b   :  { %v2099_v6 = vpack.c.bf16 %v1218_v3, %v1211_v2 }
 0x79d   :  { %1641 = vmatpush1.msk.msra.mxu1 %vm575_vm1, %v1251_v10  ;;  %v1240_v10 = vld [vmem:[%s3699_s9 + $0x4f8] sm:$0xff] }
 0x79e   :  { %1456 = vmatmul.mubr.f32.vlgmr.msra.gmra.mrb[16].mxu1 %v3359_v63  ;;  %2062 = vmatprep.subr.bf16.mxu1 %v2061_v11  ;;  %v1247_v11 = vld [vmem:[%s3699_s9 + $0x530] sm:$0xff] }
 0x79f   :  { %2064 = vmatpush1.bf16.msra.mxu1 %v2063_v12  ;;  %1645 = vmatprep.mubr.msk.f32.mxu1 %vm571_vm2, %v3351_v59  ;;  %v2071_v59 = vpack.c.bf16 %v1120_v21, %v1113_v20  ;;  %v2103_v12 = vpack.c.bf16 %v1232_v9, %v1225_v8  ;;  %v1636_v20 = vld [vmem:[%s3691_s10 + $0x7] ss:$8 sm:$0x70] }
 0x7a0   :  { %2066 = vmatprep.subr.bf16.mxu1 %v2065_v13  ;;  %v2105_v13 = vpack.c.bf16 %v1247_v11, %v1240_v10 }
 0x7a3   :  { %2068 = vmatpush1.bf16.msra.mxu1 %v2067_v18  ;;  %v1253_v18 = vld [vmem:[%s3699_s9 + $0x560] sm:$0xf] }
 0x7a4   :  { %2070 = vmatprep.subr.bf16.mxu1 %v2069_v19  ;;  %v1635_v19 = vld [vmem:[%s3691_s10 + $0x7] ss:$8 sm:$0xf] }
 0x7a5   :  { %v1259_v21 = vor.u32 %v1636_v20, %v1635_v19 }
 0x7a7   :  { %2072 = vmatpush1.bf16.msra.mxu1 %v2071_v59  ;;  %v1264_v23 = vrot.slane %v1259_v21, %v2963_v30  ;;  %v1288_v59 = vrot.slane %v1259_v21, %v1287_v22  ;;  %v1284_v54 = vrot.slane %v1259_v21, %v1283_v45 }
 0x7a8   :  { %2074 = vmatprep.subr.bf16.mxu1 %v2073_v24  ;;  %v1268_v24 = vrot.slane %v1259_v21, %v2969_v32  ;;  %v1271_v32 = vsub.s32 2, %v2960_v29 }
 0x7aa   :  { %v1272_v37 = vrot.slane %v1259_v21, %v1271_v32 }
 0x7ab   :  { %2076 = vmatpush1.bf16.msra.mxu1 %v2075_v31 }
 0x7ac   :  { %2078 = vmatprep.subr.bf16.mxu1 %v2077_v33 }
 0x7af   :  { %2080 = vmatpush1.bf16.msra.mxu1 %v2079_v38  ;;  %v1276_v38 = vrot.slane %v1259_v21, %v1275_v36 }
 0x7b0   :  { %2082 = vmatprep.subr.bf16.mxu1 %v2081_v39 }
 0x7b3   :  { %2084 = vmatpush1.bf16.msra.mxu1 %v2083_v44 }
 0x7b4   :  { %2086 = vmatprep.subr.bf16.mxu1 %v2085_v1  ;;  %v1279_v1 = vsub.s32 4, %v2960_v29 }
 0x7b6   :  { %v1280_v46 = vrot.slane %v1259_v21, %v1279_v1 }
 0x7b7   :  { %2088 = vmatpush1.bf16.msra.mxu1 %v2087_v48 }
 0x7b8   :  { %2090 = vmatprep.subr.bf16.mxu1 %v2089_v49 }
 0x7bb   :  { %2092 = vmatpush1.bf16.msra.mxu1 %v2091_v55 }
 0x7bc   :  { %2094 = vmatprep.subr.bf16.mxu1 %v2093_v56 }
 0x7bf   :  { %2096 = vmatpush1.bf16.msra.mxu1 %v2095_v62 }
 0x7c0   :  { %2098 = vmatprep.subr.bf16.mxu1 %v2097_v0 }
 0x7c3   :  { %2100 = vmatpush1.bf16.msra.mxu1 %v2099_v6 }
 0x7c4   :  { %2102 = vmatprep.subr.bf16.mxu1 %v2101_v7 }
 0x7c7   :  { %2104 = vmatpush1.bf16.msra.mxu1 %v2103_v12 }
 0x7c8   :  { %2106 = vmatprep.subr.bf16.mxu1 %v2105_v13 }
 0x7cb   :  { %2108 = vmatpush1.bf16.msra.mxu1 %v2107_v16 }
 0x7cc   :  { %1643 = vmatprep.subr.msk.mxu1 %vm575_vm1, %v1254_v17 }
 0x7cf   :  { %1644 = vmatpush1.msk.msra.mxu1 %vm575_vm1, %v1253_v18 }
 0x7d0   :  { %1527 = vmatmul.mubr.f32.vlgmr.msra.gmra.mrb[18].mxu1 %v3359_v63 }
 0x83f   :  { %v1386_v25 = vpop.f32.mrb[14].mxu1  ;;  %v1599_v26 = vpop.f32.mrb[2].mxu0 }
 0x840   :  { %v1387_v27 = vadd.f32 %v1386_v25, %v1264_v23  ;;  %v1600_v63 = vadd.f32 %v1599_v26, %v1288_v59  ;;  %v1388_v28 = vpop.f32.mrb[15].mxu1  ;;  %v1601_v31 = vpop.f32.mrb[3].mxu0 }
 0x841   :  { %v1389_v33 = vadd.f32 %v1388_v28, %v1268_v24 }
 0x842   :  { %2175 = vtanh.f32 %v1387_v27 }
 0x843   :  { %2177 = vtanh.f32 %v1600_v63 }
 0x844   :  { %2179 = vtanh.f32 %v1389_v33 }
 0x84c   :  { %v2176_v34 = vpop.eup %2175 }
 0x84d   :  { %v2178_v35 = vpop.eup %2177  ;;  %1610 = vst [vmem:[%s3700_s12] sm:$0xff] %v2176_v34 }
 0x84e   :  { %v2180_v30 = vpop.eup %2179  ;;  %1616 = vst.msk [vmem:[%s3700_s12 + $0x30] sm:$0xff] %vm255_vm0, %v2178_v35 }
 0x84f   :  { %1611 = vst [vmem:[%s3700_s12 + $0x8] sm:$0xff] %v2180_v30 }
 0x871   :  { %v1457_v39 = vpop.f32.mrb[16].mxu1 }
 0x872   :  { %v1458_v40 = vadd.f32 %v1457_v39, %v1272_v37  ;;  %v1459_v41 = vpop.f32.mrb[17].mxu1 }
 0x873   :  { %v1460_v42 = vadd.f32 %v1459_v41, %v1276_v38 }
 0x874   :  { %2181 = vtanh.f32 %v1458_v40 }
 0x875   :  { %2183 = vtanh.f32 %v1460_v42 }
 0x87e   :  { %v2182_v43 = vpop.eup %2181 }
 0x87f   :  { %v2184_v44 = vpop.eup %2183  ;;  %1612 = vst [vmem:[%s3700_s12 + $0x10] sm:$0xff] %v2182_v43 }
 0x880   :  { %1613 = vst [vmem:[%s3700_s12 + $0x18] sm:$0xff] %v2184_v44 }
 0x8a3   :  { %v1528_v47 = vpop.f32.mrb[18].mxu1 }
 0x8a4   :  { %v1529_v48 = vadd.f32 %v1528_v47, %v1280_v46  ;;  %v1530_v49 = vpop.f32.mrb[19].mxu1 }
 0x8a5   :  { %v1531_v50 = vadd.f32 %v1530_v49, %v1284_v54 }
 0x8a6   :  { %2185 = vtanh.f32 %v1529_v48 }
 0x8a7   :  { %2187 = vtanh.f32 %v1531_v50 }
 0x8b0   :  { %v2186_v51 = vpop.eup %2185 }
 0x8b1   :  { %v2188_v52 = vpop.eup %2187  ;;  %1614 = vst [vmem:[%s3700_s12 + $0x20] sm:$0xff] %v2186_v51 }
 0x8b2   :  { %1615 = vst [vmem:[%s3700_s12 + $0x28] sm:$0xff] %v2188_v52 }

</bundles_post_ra>
